<compile_context>
chip_gen: v5e
topology: v5e:2x2
jax: 0.10.0
libtpu: 0.0.40
codegen_flags: <defaults>
</compile_context>

<pallas_src>
from functools import partial

import numpy as np
import jax
import jax.numpy as jnp
from jax.experimental import pallas as pl
from jax.experimental.pallas import tpu as pltpu

_CAND_BLOCK = 32                   # candidates per grid step (sweepable 32-128)
_VMEM_LIMIT = 32 * 1024 * 1024     # explicit scoped-VMEM limit (v5e default 16 MiB)


def _round_up(x, m):
    return ((x + m - 1) // m) * m


# ---------------------------------------------------------------------------
# Kernel 1: residual column energies + norm-match indicator, fused output.
#   row 0: col_sq_i = ||A_i||^2 - (S^T A)_i . (W^T A)_i     (W = S @ pinv(S^T S))
#   row 1: I_soft_i = any_j | ||S_j|| - ||A_i|| | < 1e-5 * (||A_i|| + 1e-10)
# Grid ("parallel") tiles the (128-padded) column axis of A.
# ---------------------------------------------------------------------------
def _residual_stats_kernel(a_ref, swt_ref, snorm_ref, out_ref):
    A = a_ref[...]              # (n, TD) f32
    SWt = swt_ref[...]          # (2*m_pad, n): rows [0:m_pad]=S^T, [m_pad:]=W^T
    s_norm = snorm_ref[...]     # (m_pad, 1); padded rows hold a 1e30 sentinel
    m_pad = snorm_ref.shape[0]

    # One small matmul produces both S^T A and W^T A.
    B = jnp.dot(SWt, A, preferred_element_type=jnp.float32)    # (2*m_pad, TD)
    StA = B[:m_pad, :]
    WtA = B[m_pad:, :]

    a_sq = jnp.sum(A * A, axis=0, keepdims=True)               # (1, TD)
    proj = jnp.sum(StA * WtA, axis=0, keepdims=True)           # (1, TD)
    col_sq = jnp.maximum(a_sq - proj, 0.0)                     # ||E_i||^2 >= 0

    a_norm = jnp.sqrt(a_sq)                                    # (1, TD)
    # Divide-free form of |s - a| / (a + 1e-10) < 1e-5.
    match = (jnp.abs(s_norm - a_norm)
             < 1e-5 * (a_norm + 1e-10)).astype(jnp.float32)    # (m_pad, TD)
    i_soft = jnp.max(match, axis=0, keepdims=True)             # (1, TD)

    # Single lane-dense (8, TD) tile: row 0 = col_sq, row 1 = I_soft.
    rows = jax.lax.broadcasted_iota(jnp.int32, out_ref.shape, 0)
    out_ref[...] = jnp.where(
        rows == 0, jnp.broadcast_to(col_sq, out_ref.shape),
        jnp.where(rows == 1, jnp.broadcast_to(i_soft, out_ref.shape), 0.0))


def _pick_col_tile(dp):
    # dp is a multiple of 128; one resident block for small d, tile big d.
    if dp <= 512:
        return dp
    for td in (512, 256, 128):
        if dp % td == 0:
            return td
    return 128


def _residual_and_stats(A_pad, SWt, s_norm_col):
    n, dp = A_pad.shape
    two_m_pad = SWt.shape[0]
    m_pad = s_norm_col.shape[0]
    td = _pick_col_tile(dp)
    return pl.pallas_call(
        _residual_stats_kernel,
        out_shape=jax.ShapeDtypeStruct((8, dp), jnp.float32),
        grid=(dp // td,),
        in_specs=[
            pl.BlockSpec((n, td), lambda t: (0, t)),
            pl.BlockSpec((two_m_pad, n), lambda t: (0, 0)),
            pl.BlockSpec((m_pad, 1), lambda t: (0, 0)),
        ],
        out_specs=pl.BlockSpec((8, td), lambda t: (0, t)),
        compiler_params=pltpu.CompilerParams(
            dimension_semantics=("parallel",),
            vmem_limit_bytes=_VMEM_LIMIT),
    )(A_pad, SWt, s_norm_col)


# ---------------------------------------------------------------------------
# Kernel 2: batched swap-search projection energy (Gram form — no A, no Ct).
#   energy_c = || C_c pinv(C_c) A ||_F^2 = sum( G * (P_c @ G) )
#   objective_c^2 = ||A||_F^2 - energy_c   (||A||_F^2 hoisted to the wrapper)
# Pinv blocks arrive pre-flattened as (cb*d, d) so each grid step is ONE fat
# (cb*d, d) @ (d, d) MXU matmul against the resident Gram G.
# ---------------------------------------------------------------------------
def _proj_energy_kernel(g_ref, p_ref, out_ref):
    d = g_ref.shape[0]
    cb = out_ref.shape[0]
    G = g_ref[...]                                                   # (d, d)
    T = jnp.dot(p_ref[...], G, preferred_element_type=jnp.float32)  # (cb*d, d)
    prod = T.reshape(cb, d, d) * G[None, :, :]                       # (cb, d, d)
    e = jnp.sum(prod, axis=2)                                        # (cb, d)
    e = jnp.sum(e, axis=1, keepdims=True)                            # (cb, 1)
    # Lane-dense unmasked store; the wrapper reads column 0.
    out_ref[...] = jnp.broadcast_to(e, out_ref.shape)                # (cb, 128)


def _batched_proj_energy(G, P_flat, cb):
    d = G.shape[0]
    nc = P_flat.shape[0] // d
    out = pl.pallas_call(
        _proj_energy_kernel,
        out_shape=jax.ShapeDtypeStruct((nc, 128), jnp.float32),
        grid=(nc // cb,),
        in_specs=[
            pl.BlockSpec((d, d), lambda c: (0, 0)),        # resident Gram of A
            pl.BlockSpec((cb * d, d), lambda c: (c, 0)),   # cb pinv blocks / step
        ],
        out_specs=pl.BlockSpec((cb, 128), lambda c: (c, 0)),
        compiler_params=pltpu.CompilerParams(
            dimension_semantics=("parallel",),   # >=2 steps feed both v7x TCs
            vmem_limit_bytes=_VMEM_LIMIT),
    )(G, P_flat)
    return out[:, 0]


def _pick_cand_block(n_cand):
    # Big blocks amortize the ~0.35us/grid-step overhead; keep >=2 grid steps
    # when possible so dimension_semantics=("parallel",) shards across v7x TCs.
    if n_cand >= 2 * _CAND_BLOCK:
        return _CAND_BLOCK
    half = ((n_cand + 1) // 2 + 7) // 8 * 8
    return int(min(_CAND_BLOCK, max(8, half)))


@partial(jax.jit, static_argnames=("cb",))
def _batched_swap_search(A, masks, valid, cb):
    """masks: (nc_pad, d) in {0,1}; valid: (nc_pad,) bool. -> (argmin, min_obj)."""
    nc, d = masks.shape
    G = A.T @ A                                                     # (d, d)
    Gm = masks[:, :, None] * (G[None, :, :] * masks[:, None, :])    # (nc, d, d)
    # TODO(synk): pseudo-inverse (batched eigh/SVD) has no clean Pallas
    # equivalent; it stays in XLA — but now on (d, d) Grams, independent of n.
    P = jnp.linalg.pinv(Gm, hermitian=True)                         # (nc, d, d)
    # Re-mask so rows/cols outside each candidate are exactly zero; then
    # energy_c = sum(G * (P_c @ G)) needs neither A nor the masks in-kernel.
    P = masks[:, :, None] * (P * masks[:, None, :])
    energy = _batched_proj_energy(G, P.reshape(nc * d, d), cb)      # (nc,)
    obj = jnp.sqrt(jnp.maximum(jnp.sum(A * A) - energy, 0.0))
    obj = jnp.where(valid, obj, jnp.inf)
    best = jnp.argmin(obj)                           # first minimum wins (loop order)
    return best, obj[best]


@partial(jax.jit, static_argnames=("num_samples",))
def _stats_and_candidates(A, S, key, num_samples):
    """Device program: residual-stats kernel + Gumbel-top-k candidate sampling."""
    n, d = A.shape
    m = S.shape[1]
    G = S.T @ S
    # TODO(synk): pseudo-inverse (SVD) has no clean Pallas equivalent; stays in XLA.
    Minv = jnp.linalg.pinv(G)
    W = S @ Minv                                 # S @ Minv @ S^T is the projector
    m_pad = max(8, _round_up(m, 8))
    SWt = jnp.zeros((2 * m_pad, n), jnp.float32)
    SWt = SWt.at[:m, :].set(S.T).at[m_pad:m_pad + m, :].set(W.T)
    s_norm = jnp.sqrt(jnp.maximum(jnp.diagonal(G), 0.0))
    s_norm_col = jnp.full((m_pad, 1), 1e30, jnp.float32).at[:m, 0].set(s_norm)

    dp = _round_up(d, 128)                       # lane-dense kernel-1 output tile
    A_pad = A if dp == d else jnp.pad(A, ((0, 0), (0, dp - d)))
    stats = _residual_and_stats(A_pad, SWt, s_norm_col)     # (8, dp)
    col_norms = stats[0, :d]
    I_soft = stats[1, :d]

    probs = col_norms / (jnp.sum(col_norms) + 1e-10)
    u = jax.random.uniform(key, (d,), dtype=jnp.float32)
    gumbel = -jnp.log(-jnp.log(u + 1e-10) + 1e-10)
    logits = jnp.log(probs + 1e-10) + gumbel
    _, C_indices = jax.lax.top_k(logits, num_samples)
    return I_soft, C_indices


@partial(jax.jit, static_argnames=("num_samples",))
def _candidates_no_S(A, key, num_samples):
    d = A.shape[1]
    col_norms = jnp.sum(A * A, axis=0)           # E = A when S is empty
    probs = col_norms / (jnp.sum(col_norms) + 1e-10)
    u = jax.random.uniform(key, (d,), dtype=jnp.float32)
    gumbel = -jnp.log(-jnp.log(u + 1e-10) + 1e-10)
    logits = jnp.log(probs + 1e-10) + gumbel
    _, C_indices = jax.lax.top_k(logits, num_samples)
    return jnp.zeros((d,), jnp.float32), C_indices


# ---------------------------------------------------------------------------
# ContinuousLS.forward
# ---------------------------------------------------------------------------
def continuous_ls(A_prime, k, S, temperature=1.0, key=None):
    A = jnp.asarray(A_prime, jnp.float32)
    S = jnp.asarray(S, jnp.float32)
    n, d = A.shape
    m = S.shape[1]
    if key is None:
        key = jax.random.PRNGKey(0)
    k_gumbel, k_pick = jax.random.split(key)
    num_samples = min(10 * k, d)

    if m > 0:
        I_soft, C_indices = _stats_and_candidates(A, S, k_gumbel, num_samples)
    else:
        I_soft, C_indices = _candidates_no_S(A, k_gumbel, num_samples)

    # NOTE: softmax(ones / T) is uniform for any T — kept for spec parity.
    p_soft = jax.nn.softmax(jnp.ones((num_samples,), jnp.float32) / temperature)

    # ---- one host sync for the tiny indicator + sampled candidate indices ----
    I_soft_host, C_idx_host = jax.device_get((I_soft, C_indices))
    I_soft_np = np.array(I_soft_host)
    C_idx_np = np.array(C_idx_host)
    sel0 = np.where(I_soft_np > 0.5)[0]

    min_idx = -1
    if sel0.size > 0:
        # Build ALL (num_samples x |sel0|) candidate masks at once (host-side
        # index bookkeeping only — no device round-trips in the loop body).
        n_sel = int(sel0.size)
        base = (I_soft_np > 0.5).astype(np.float32)
        masks = np.broadcast_to(base, (num_samples, n_sel, d)).copy()
        ii = np.arange(num_samples)[:, None]
        jj = np.arange(n_sel)[None, :]
        masks[ii, jj, C_idx_np[:, None]] = 1.0     # temp_I[p_idx] = 1
        masks[ii, jj, sel0[None, :]] = 0.0         # temp_I_q[q_idx] = 0 (q wins ties)
        masks = masks.reshape(num_samples * n_sel, d)
        q_of = np.broadcast_to(sel0[None, :], (num_samples, n_sel)).reshape(-1)

        # Filter empty candidates BEFORE the batched pinv; (p outer, q inner)
        # order is preserved so the first-minimum rule matches the reference.
        valid = masks.sum(axis=1) > 0
        masks = masks[valid]
        q_of = q_of[valid]
        n_cand = masks.shape[0]

        if n_cand > 0:
            cb = _pick_cand_block(n_cand)
            nc_pad = _round_up(n_cand, cb)
            masks_pad = np.zeros((nc_pad, d), np.float32)
            masks_pad[:n_cand] = masks
            valid_pad = np.zeros((nc_pad,), np.bool_)
            valid_pad[:n_cand] = True

            best, _ = _batched_swap_search(
                A, jnp.asarray(masks_pad), jnp.asarray(valid_pad), cb)
            best = int(best)                        # single sync for the search
            min_idx = int(q_of[best])

    if min_idx != -1:
        I_soft_np[min_idx] = 0.0
        pick = int(jax.random.choice(k_pick, num_samples, p=p_soft))
        best_p_idx = int(C_idx_np[pick])
        I_soft_np[best_p_idx] = 1.0

    selected = np.where(I_soft_np > 0.5)[0]
    return jnp.take(A, jnp.asarray(selected, jnp.int32), axis=1)


if __name__ == "__main__":
    key = jax.random.PRNGKey(0)
    n, d, k = 16, 64, 2
    A_prime = jax.random.normal(key, (n, d), dtype=jnp.float32)
    # Current selected submatrix: 3 columns taken from A_prime (typical LS state).
    S = A_prime[:, jnp.array([3, 10, 25])]
    out = continuous_ls(A_prime, k, S, temperature=1.0, key=jax.random.PRNGKey(1))
    out = jax.block_until_ready(out)
    assert out.shape[0] == n and out.shape[1] >= 1
    print("KERNEL_OK")
</pallas_src>

<mosaic_0001>
module attributes {stable_mosaic.version = 11 : i64} {
  func.func @_residual_stats_kernel(%arg0: i32, %arg1: memref<16x128xf32, #tpu.memory_space<vmem>>, %arg2: memref<16x16xf32, #tpu.memory_space<vmem>>, %arg3: memref<8x1xf32, #tpu.memory_space<vmem>>, %arg4: memref<8x128xf32, #tpu.memory_space<vmem>>) attributes {dimension_semantics = [#tpu.dimension_semantics<parallel>], iteration_bounds = array<i64: 1>, scalar_prefetch = 0 : i64, scratch_operands = 0 : i64, tpu.core_type = #tpu.core_type<tc>, window_params = [{transform_indices = @transform_0, window_bounds = array<i64: 16, 128>}, {pipeline_mode = #tpu.pipeline_mode<synchronous>, transform_indices = @transform_1, window_bounds = array<i64: 16, 16>}, {pipeline_mode = #tpu.pipeline_mode<synchronous>, transform_indices = @transform_2, window_bounds = array<i64: 8, 1>}, {transform_indices = @transform_3, window_bounds = array<i64: 8, 128>}]} {
    %c0 = arith.constant 0 : index
    %c0_0 = arith.constant 0 : index
    %0 = vector.load %arg1[%c0, %c0_0] : memref<16x128xf32, #tpu.memory_space<vmem>>, vector<16x128xf32>
    %c0_1 = arith.constant 0 : index
    %c0_2 = arith.constant 0 : index
    %1 = vector.load %arg2[%c0_1, %c0_2] : memref<16x16xf32, #tpu.memory_space<vmem>>, vector<16x16xf32>
    %c0_3 = arith.constant 0 : index
    %c0_4 = arith.constant 0 : index
    %2 = vector.load %arg3[%c0_3, %c0_4] : memref<8x1xf32, #tpu.memory_space<vmem>>, vector<8x1xf32>
    %cst = arith.constant dense<0.000000e+00> : vector<16x128xf32>
    %3 = tpu.matmul %1, %0, %cst {dimension_numbers = #tpu.dot_dimension_numbers<[1], [0], [0], [1], [0, 0, 1, 1], [], []>} : vector<16x16xf32>, vector<16x128xf32>, vector<16x128xf32> -> vector<16x128xf32>
    %4 = vector.extract_strided_slice %3 {offsets = [0, 0], sizes = [8, 128], strides = [1, 1]} : vector<16x128xf32> to vector<8x128xf32>
    %5 = vector.extract_strided_slice %3 {offsets = [8, 0], sizes = [8, 128], strides = [1, 1]} : vector<16x128xf32> to vector<8x128xf32>
    %6 = arith.mulf %0, %0 : vector<16x128xf32>
    %cst_5 = arith.constant dense<0.000000e+00> : vector<128xf32>
    %7 = vector.multi_reduction <add>, %6, %cst_5 [0] : vector<16x128xf32> to vector<128xf32>
    %8 = vector.shape_cast %7 : vector<128xf32> to vector<1x128xf32>
    %9 = arith.mulf %4, %5 : vector<8x128xf32>
    %cst_6 = arith.constant dense<0.000000e+00> : vector<128xf32>
    %10 = vector.multi_reduction <add>, %9, %cst_6 [0] : vector<8x128xf32> to vector<128xf32>
    %11 = vector.shape_cast %10 : vector<128xf32> to vector<1x128xf32>
    %12 = arith.subf %8, %11 : vector<1x128xf32>
    %cst_7 = arith.constant 0.000000e+00 : f32
    %13 = vector.broadcast %cst_7 : f32 to vector<1x128xf32>
    %14 = arith.maximumf %12, %13 : vector<1x128xf32>
    %15 = math.sqrt %8 : vector<1x128xf32>
    %16 = vector.broadcast %2 : vector<8x1xf32> to vector<8x128xf32>
    %17 = vector.broadcast %15 : vector<1x128xf32> to vector<8x128xf32>
    %18 = arith.subf %16, %17 : vector<8x128xf32>
    %19 = math.absf %18 : vector<8x128xf32>
    %cst_8 = arith.constant 1.000000e-10 : f32
    %20 = vector.broadcast %cst_8 : f32 to vector<1x128xf32>
    %21 = arith.addf %15, %20 : vector<1x128xf32>
    %cst_9 = arith.constant 9.99999974E-6 : f32
    %22 = vector.broadcast %cst_9 : f32 to vector<1x128xf32>
    %23 = arith.mulf %22, %21 : vector<1x128xf32>
    %24 = vector.broadcast %23 : vector<1x128xf32> to vector<8x128xf32>
    %25 = arith.cmpf olt, %19, %24 : vector<8x128xf32>
    %26 = arith.extui %25 : vector<8x128xi1> to vector<8x128xi32>
    %27 = arith.sitofp %26 : vector<8x128xi32> to vector<8x128xf32>
    %cst_10 = arith.constant dense<0xFF800000> : vector<128xf32>
    %28 = vector.multi_reduction <maximumf>, %27, %cst_10 [0] : vector<8x128xf32> to vector<128xf32>
    %29 = vector.shape_cast %28 : vector<128xf32> to vector<1x128xf32>
    %30 = tpu.iota {dimensions = array<i32: 0>} : vector<8x128xi32>
    %c0_i32 = arith.constant 0 : i32
    %31 = vector.broadcast %c0_i32 : i32 to vector<8x128xi32>
    %32 = arith.cmpi eq, %30, %31 : vector<8x128xi32>
    %33 = vector.shape_cast %14 : vector<1x128xf32> to vector<1x128xf32>
    %34 = vector.broadcast %33 : vector<1x128xf32> to vector<8x128xf32>
    %c1_i32 = arith.constant 1 : i32
    %35 = vector.broadcast %c1_i32 : i32 to vector<8x128xi32>
    %36 = arith.cmpi eq, %30, %35 : vector<8x128xi32>
    %37 = vector.shape_cast %29 : vector<1x128xf32> to vector<1x128xf32>
    %38 = vector.broadcast %37 : vector<1x128xf32> to vector<8x128xf32>
    %cst_11 = arith.constant 0.000000e+00 : f32
    %39 = vector.broadcast %cst_11 : f32 to vector<8x128xf32>
    %40 = arith.select %36, %38, %39 : vector<8x128xi1>, vector<8x128xf32>
    %41 = arith.select %32, %34, %40 : vector<8x128xi1>, vector<8x128xf32>
    %c0_12 = arith.constant 0 : index
    %c0_13 = arith.constant 0 : index
    %42 = vector.load %arg4[%c0_12, %c0_13] : memref<8x128xf32, #tpu.memory_space<vmem>>, vector<8x128xf32>
    tpu.vector_store %arg4[%c0_12, %c0_13], %41 {strides = array<i32>} : memref<8x128xf32, #tpu.memory_space<vmem>>, vector<8x128xf32>,
    return
  }
  func.func @transform_0(%arg0: i32) -> (i32, i32) {
    %c0_i32 = arith.constant 0 : i32
    %c0_i32_0 = arith.constant 0 : i32
    return %c0_i32, %arg0 : i32, i32
  }
  func.func @transform_1(%arg0: i32) -> (i32, i32) {
    %c0_i32 = arith.constant 0 : i32
    %c0_i32_0 = arith.constant 0 : i32
    %c0_i32_1 = arith.constant 0 : i32
    return %c0_i32, %c0_i32_0 : i32, i32
  }
  func.func @transform_2(%arg0: i32) -> (i32, i32) {
    %c0_i32 = arith.constant 0 : i32
    %c0_i32_0 = arith.constant 0 : i32
    %c0_i32_1 = arith.constant 0 : i32
    return %c0_i32, %c0_i32_0 : i32, i32
  }
  func.func @transform_3(%arg0: i32) -> (i32, i32) {
    %c0_i32 = arith.constant 0 : i32
    %c0_i32_0 = arith.constant 0 : i32
    return %c0_i32, %arg0 : i32, i32
  }
}

</mosaic_0001>

<bundles_post_ra>
// kernel: custom-call.49
= control target key start
LH: loop header
LB: loop body
LE: loop exit
PB: predicated region body
PF: predicated region fallthrough
CT: control target
= control target key end

     0   :  { %v400_v1 = vmov 0.0   ;;  %s420_s11 = smov 0   ;;  %s505_s0 = inlined_call_operand.vmem [shape: f32[6,3], index: 0, kind: input, shape index: {}]   ;;  %s506_s1 = inlined_call_operand.vmem [shape: f32[6,3], index: 1, kind: output, shape index: {0}]   ;;  %s507_s2 = inlined_call_operand.vmem [shape: f32[3], index: 2, kind: output, shape index: {1}]  }
   0x1   :  { %v32_v0 = vld [vmem:[%s505_s0] sm:$0xff]  ;;  %39 = vst [vmem:[#allocation2] sm:$0x1] %v400_v1 }
   0x2   :  { %38 = vst [vmem:[#allocation1] sm:$0xff] %v32_v0 }
   0x3 LB: > { %v47_v2 = vlaneseq  ;;  %v429_v4 = vstv %s398_s11  ;;  %s79_s0 = scalar_lea.vmem [#allocation1], %s398_s11  ;;  %s172_s12 = smov [#allocation1]  ;;  %s398_s11 = sphi %s420_s11, %s45_s11  }
   0x4   : > { %s207_s13 = scalar_lea.vmem [#allocation4], %s398_s11  ;;  %s223_s14 = smov [#allocation1] }
   0x5   : > { %v426_v3 = vshrl.u32 %v47_v2, 7  ;;  %s224_s15 = smov [#allocation4] }
   0x7   : > { %vm51_vm0 = vcmp.gt.s32.totalorder %v426_v3, %v429_v4  ;;  %vm52_vm1 = vcmp.lt.s32.totalorder %v426_v3, 6  ;;  %v175_v3 = vmov %v426_v3 }
   0x8   : > { %vm53_vm2 = vmand %vm51_vm0, %vm52_vm1  ;;  %vm179_vm13 = vcmp.gt.s32.totalorder %v175_v3, %v429_v4  ;;  %vm180_vm14 = vcmp.lt.s32.totalorder %v175_v3, 6  ;;  %v227_v3 = vmov %v426_v3 }
   0x9   : > { %v46_v5 = vld [vmem:[#allocation1] sm:$0xff] }
   0xa   : > { %v54_v6 = vsel %vm53_vm2, %v46_v5, 0.0  ;;  %v439_v18 = vld [vmem:[%s79_s0] ss:$0 sm:$0xff] }
   0xb   : > { %v55_v7 = vmul.f32 %v54_v6, %v54_v6  ;;  %v81_v21 = vand.u32 2147483647, %v439_v18  ;;  %vm150_vm12 = vcmp.lt.f32.partialorder %v439_v18, 0.0 }
   0xd   : > { %v56_v8 = vrot.slane %v55_v7, 4  ;;  %v82_v25 = vmax.f32 %v81_v21, 0.0 }
   0xf   : > { %v57_v9 = vadd.f32 %v56_v8, %v55_v7 }
  0x11   : > { %v58_v10 = vrot.slane %v57_v9, 2 }
  0x13   : > { %v59_v11 = vadd.f32 %v58_v10, %v57_v9 }
  0x15   : > { %v60_v12 = vrot.slane %v59_v11, 1 }
  0x17   : > { %v434_v13 = vadd.f32 %v60_v12, %v59_v11 }
  0x19   : > { %382 = vrsqrt.f32 %v434_v13  ;;  %vm69_vm3 = vcmp.eq.f32.partialorder %v434_v13, inf  ;;  %v72_v22 = vand.u32 2147483648, %v434_v13  ;;  %vm71_vm4 = vcmp.eq.f32.partialorder %v434_v13, 0.0 }
  0x1f   : > { %v383_v14 = vpop.eup %382 }
  0x20   : > { %v63_v15 = vmul.f32 %v383_v14, %v434_v13 }
  0x22   : > { %v64_v16 = vmul.f32 %v383_v14, %v63_v15 }
  0x24   : > { %v65_v17 = vmul.f32 0.5, %v64_v16  ;;  %v176_v16 = vld [vmem:[%s172_s12] sm:$0xff] }
  0x26   : > { %v66_v19 = vsub.f32 1.5, %v65_v17 }
  0x28   : > { %v67_v20 = vmul.f32 %v383_v14, %v66_v19 }
  0x2a   : > { %v68_v23 = vmul.f32 %v67_v20, %v434_v13  ;;  %v201_v20 = vand.u32 127, %v47_v2 }
  0x2c   : > { %v70_v24 = vsel %vm69_vm3, %v434_v13, %v68_v23 }
  0x2d   : > { %v73_v26 = vsel %vm71_vm4, %v72_v22, %v70_v24 }
  0x2e   : > { %v83_v27 = vand.u32 2147483647, %v73_v26 }
  0x30   : > { %v84_v28 = vmax.f32 %v82_v25, %v83_v27 }
  0x32   : > { %384 = vrcp.f32 %v84_v28  ;;  %v96_v31 = vand.u32 2147483648, %v84_v28  ;;  %vm90_vm5 = vweird.f32 %v84_v28  ;;  %v94_v33 = vand.u32 2147483647, %v84_v28 }
  0x33   : > { %vm135_vm11 = vcmp.eq.f32.partialorder %v84_v28, 0.0 }
  0x34   : > { %v97_v35 = vor.u32 1.1754944e-38, %v96_v31  ;;  %vm95_vm8 = vcmp.eq.f32.partialorder %v94_v33, 8.507059e+37 }
  0x38   : > { %v385_v29 = vpop.eup %384 }
  0x39   : > { %v86_v30 = vmul.f32 %v385_v29, %v84_v28  ;;  %vm91_vm6 = vweird.f32 %v385_v29 }
  0x3a   : > { %vm92_vm7 = vmor %vm90_vm5, %vm91_vm6 }
  0x3b   : > { %v87_v32 = vsub.f32 1.0, %v86_v30  ;;  %vm181_vm5 = vmand %vm179_vm13, %vm180_vm14 }
  0x3c   : > { %v182_v24 = vsel %vm181_vm5, %v176_v16, 0.0 }
  0x3d   : > { %v88_v34 = vmul.f32 %v385_v29, %v87_v32 }
  0x3f   : > { %v89_v36 = vadd.f32 %v385_v29, %v88_v34 }
  0x41   : > { %v93_v37 = vsel %vm92_vm7, %v385_v29, %v89_v36  ;;  %v220_v36 = vld [vmem:[#allocation2] ss:$0 sm:$0xff] }
  0x42   : > { %v98_v38 = vsel %vm95_vm8, %v97_v35, %v93_v37  ;;  %v401_v35 = vmov 1.0   ;;  %v230_v37 = vld [vmem:[%s223_s14] sm:$0xff]  ;;  %s240_s14 = smov %s223_s14 }
  0x43   : > { %v99_v39 = vmul.f32 %v98_v38, %v81_v21  ;;  %v115_v40 = vmul.f32 0.0, %v98_v38  ;;  %v132_v41 = vmul.f32 %v98_v38, %v83_v27  ;;  %s265_s16 = scalar_lea.vmem %s240_s14, %s398_s11  ;;  %s45_s11 = sadd.s32 1, %s398_s11  }
  0x44   : > { %p42_p0 = scmp.ge.s32.totalorder %s45_s11, 3  }
  0x45   : > { %v100_v42 = vmul.f32 %v99_v39, %v99_v39  ;;  %v116_v43 = vmul.f32 %v115_v40, %v115_v40  ;;  %v133_v44 = vmul.f32 %v132_v41, %v132_v41 }
  0x47   : > { %v117_v45 = vadd.f32 %v116_v43, %v100_v42 }
  0x49   : > { %v134_v46 = vadd.f32 %v133_v44, %v117_v45 }
  0x4b   : > { %386 = vrsqrt.f32 %v134_v46  ;;  %vm143_vm9 = vcmp.eq.f32.partialorder %v134_v46, inf  ;;  %v146_v53 = vand.u32 2147483648, %v134_v46  ;;  %vm145_vm10 = vcmp.eq.f32.partialorder %v134_v46, 0.0 }
  0x51   : > { %v387_v47 = vpop.eup %386 }
  0x52   : > { %v137_v48 = vmul.f32 %v387_v47, %v134_v46 }
  0x54   : > { %v138_v49 = vmul.f32 %v387_v47, %v137_v48 }
  0x56   : > { %v139_v50 = vmul.f32 0.5, %v138_v49 }
  0x58   : > { %v140_v51 = vsub.f32 1.5, %v139_v50  ;;  %v251_v50 = vld [vmem:[%s240_s14] sm:$0xff] }
  0x5a   : > { %v141_v52 = vmul.f32 %v387_v47, %v140_v51 }
  0x5c   : > { %v142_v54 = vmul.f32 %v141_v52, %v134_v46 }
  0x5e   : > { %v144_v55 = vsel %vm143_vm9, %v134_v46, %v142_v54  ;;  %vm471_vm9 = vcmp.eq.s32.totalorder %v201_v20, %v429_v4 }
  0x5f   : > { %v147_v56 = vsel %vm145_vm10, %v146_v53, %v144_v55  ;;  %vm232_vm10 = vcmp.lt.s32.totalorder %v227_v3, 6  ;;  %v244_v3 = vmov %v426_v3 }
  0x60   : > { %v148_v57 = vmul.f32 %v147_v56, %v84_v28 }
  0x62   : > { %v149_v58 = vsel %vm135_vm11, 0.0, %v148_v57  ;;  %vm253_vm11 = vcmp.gt.s32.totalorder %v201_v20, %v429_v4 }
  0x63   : > { %v151_v59 = vxor.u32 2147483648, %v149_v58 }
  0x65   : > { %v152_v60 = vsel %vm150_vm12, %v149_v58, %v151_v59 }
  0x66   : > { %v453_v61 = vsel %vm71_vm4, %v439_v18, %v152_v60  ;;  %388 = vrcp.f32 %v152_v60  ;;  %vm159_vm15 = vweird.f32 %v152_v60  ;;  %v163_v9 = vand.u32 2147483647, %v152_v60 }
  0x67   : > { %v171_v62 = vsub.f32 %v439_v18, %v453_v61  ;;  %v165_v10 = vand.u32 2147483648, %v152_v60  ;;  %v153_v26 = vsub.f32 %v152_v60, %v439_v18 }
  0x68   : > { %vm164_vm8 = vcmp.eq.f32.partialorder %v163_v9, 8.507059e+37 }
  0x69   : > { %390 = vrcp.f32 %v171_v62  ;;  %v194_v7 = vand.u32 2147483648, %v171_v62  ;;  %vm188_vm1 = vweird.f32 %v171_v62  ;;  %v192_v12 = vand.u32 2147483647, %v171_v62 }
  0x6a   : > { %v166_v21 = vor.u32 1.1754944e-38, %v165_v10 }
  0x6b   : > { %v195_v19 = vor.u32 1.1754944e-38, %v194_v7  ;;  %vm193_vm7 = vcmp.eq.f32.partialorder %v192_v12, 8.507059e+37 }
  0x6c   : > { %v389_v63 = vpop.eup %388 }
  0x6d   : > { %v155_v0 = vmul.f32 %v389_v63, %v152_v60  ;;  %vm160_vm0 = vweird.f32 %v389_v63 }
  0x6e   : > { %vm459_vm3 = vmor %vm159_vm15, %vm160_vm0 }
  0x6f   : > { %v391_v1 = vpop.eup %390  ;;  %v156_v5 = vsub.f32 1.0, %v155_v0 }
  0x70   : > { %v184_v6 = vmul.f32 %v391_v1, %v171_v62  ;;  %vm189_vm2 = vweird.f32 %v391_v1 }
  0x71   : > { %v157_v8 = vmul.f32 %v389_v63, %v156_v5  ;;  %vm190_vm6 = vmor %vm188_vm1, %vm189_vm2 }
  0x72   : > { %v185_v11 = vsub.f32 1.0, %v184_v6 }
  0x73   : > { %v158_v14 = vadd.f32 %v389_v63, %v157_v8 }
  0x74   : > { %v186_v17 = vmul.f32 %v391_v1, %v185_v11 }
  0x75   : > { %v162_v23 = vsel %vm459_vm3, %v389_v63, %v158_v14 }
  0x76   : > { %v187_v22 = vadd.f32 %v391_v1, %v186_v17  ;;  %v167_v28 = vsel %vm164_vm8, %v166_v21, %v162_v23 }
  0x77   : > { %v168_v31 = vmul.f32 %v167_v28, %v153_v26 }
  0x78   : > { %v191_v25 = vsel %vm190_vm6, %v391_v1, %v187_v22 }
  0x79   : > { %v196_v27 = vsel %vm193_vm7, %v195_v19, %v191_v25  ;;  %v170_v33 = vsel %vm71_vm4, 0.0, %v168_v31 }
  0x7a   : > { %v197_v29 = vmul.f32 %v196_v27, %v182_v24  ;;  %v213_v18 = vsel %vm471_vm9, %v170_v33, 0.0 }
  0x7c   : > { %v198_v2 = vsel %vm71_vm4, 0.0, %v197_v29  ;;  %vm261_vm4 = vcmp.ge.s32.totalorder %v244_v3, %v429_v4 }
  0x7d   : > { %v203_v32 = vsel %vm471_vm9, %v198_v2, 0.0  ;;  %vm262_vm12 = vmand %vm471_vm9, %vm261_vm4 }
  0x7e   : > { %204 = vadd.xlane.f32.xlu0 %v203_v32 }
  0x86   : > { %214 = vadd.xlane.f32.xlu0 %v213_v18 }
  0xf1   : > { %v205_v34 = vpop.xlane.xlu0 %204 }
  0xf2   : > { %206 = vst [vmem:[#allocation4] sm:$0xff] %v205_v34 }
  0xf3   : > { %208 = vst [vmem:[%s207_s13] sm:$0x1] %v401_v35 }
  0xf9   : > { %v215_v38 = vpop.xlane.xlu0 %214 }
  0xfa   : > { %v229_v39 = vld [vmem:[%s224_s15] sm:$0xff]  ;;  %v221_v13 = vsel %vm471_vm9, %v215_v38, %v220_v36  ;;  %s241_s15 = smov %s224_s15 }
  0xfb   : > { %v231_v40 = vmul.f32 %v230_v37, %v229_v39  ;;  %222 = vst [vmem:[#allocation2] sm:$0x1] %v221_v13  ;;  %v249_v49 = vld [vmem:[%s241_s15] sm:$0xff] }
  0xfd   : > { %v233_v41 = vsel %vm232_vm10, %v231_v40, 0.0 }
  0xfe   : > { %v234_v42 = vrot.slane %v233_v41, 4 }
 0x100   : > { %v235_v43 = vadd.f32 %v234_v42, %v233_v41 }
 0x102   : > { %v236_v44 = vrot.slane %v235_v43, 2  ;;  %v275_v3 = vld [vmem:[#allocation2] sm:$0x1] (%p42_p0) }
 0x103   :  { %278 = vst [vmem:[#allocation3] sm:$0x1] (%p42_p0), %v275_v3 }
 0x104   : > { %v237_v45 = vadd.f32 %v236_v44, %v235_v43 }
 0x106   : > { %v238_v46 = vrot.slane %v237_v45, 1 }
 0x108   : > { %v239_v47 = vadd.f32 %v238_v46, %v237_v45 }
 0x10a   : > { %v245_v48 = vmul.f32 %v239_v47, %v215_v38  ;;  %v330_v57 = vld [vmem:[#allocation3] sm:$0x1] (%p42_p0) }
 0x10b   :  { %331 = vst [vmem:[%s507_s2] sm:$0x1] (%p42_p0), %v330_v57 }
 0x10c   : > { %v250_v51 = vmul.f32 %v249_v49, %v245_v48 }
 0x10e   : > { %v254_v52 = vsub.f32 %v251_v50, %v250_v51 }
 0x110   : > { %v255_v53 = vsel %vm253_vm11, %v254_v52, %v251_v50 }
 0x111   : > { %v263_v54 = vsel %vm262_vm12, %v249_v49, %v255_v53 }
 0x112   : > { %264 = vst [vmem:[%s240_s14] sm:$0xff] %v263_v54 }
 0x117   :  { %44 = sbr.rel (!%p42_p0) target bundleno = 3 (0x3), region = 139 }
 0x119   : > { %v266_v55 = vld [vmem:[%s265_s16] ss:$0 sm:$0xff] }
 0x11a   : > { %v271_v56 = vsel %vm471_vm9, %v453_v61, %v266_v55 }
 0x11b   : > { %272 = vst [vmem:[%s265_s16] sm:$0x1] %v271_v56 }
 0x122   :  { %v307_v4 = vld [vmem:[#allocation1] sm:$0xff] }
 0x123   :  { %308 = vst [vmem:[%s506_s1] sm:$0xff] %v307_v4 }

// kernel: custom-call.50
= control target key start
LH: loop header
LB: loop body
LE: loop exit
PB: predicated region body
PF: predicated region fallthrough
CT: control target
= control target key end

     0   :  { %v62_v1 = vlaneseq  ;;  %vm76_vm1 = vcmask 23552   ;;  %s224_s0 = inlined_call_operand.vmem [shape: f32[3,3], index: 0, kind: input, shape index: {}]   ;;  %s225_s1 = inlined_call_operand.vmem [shape: f32[3,3], index: 1, kind: output, shape index: {}]  }
   0x1   :  { %v56_v0 = vld [vmem:[%s224_s0] sm:$0xf] }
   0x2   :  { %57 = vst [vmem:[#allocation1] sm:$0xf] %v56_v0  ;;  %v63_v3 = vand.u32 127, %v62_v1  ;;  %v65_v4 = vshrl.u32 %v62_v1, 7 }
   0x4   :  { %vm71_vm0 = vcmp.eq.s32.totalorder %v63_v3, 0  ;;  %vm67_vm2 = vcmp.eq.s32.totalorder %v63_v3, %v65_v4  ;;  %vm80_vm3 = vcmp.eq.s32.totalorder %v63_v3, 1  ;;  %vm91_vm4 = vcmp.eq.s32.totalorder %v63_v3, 2 }
   0x9   :  { %v60_v2 = vld [vmem:[#allocation1] sm:$0xf] }
   0xa   :  { %61 = vst [vmem:[#allocation0] sm:$0xf] %v60_v2 }
  0x11   :  { %v68_v5 = vld [vmem:[#allocation0] sm:$0xff] }
  0x12   :  { %v75_v6 = vld [vmem:[#allocation0 + $0x1] ss:$0 sm:$0xff]  ;;  %v72_v7 = vsel %vm71_vm0, %v68_v5, 1.0  ;;  %v86_v11 = vld [vmem:[#allocation0 + $0x2] ss:$0 sm:$0xff] }
  0x13   :  { %v77_v8 = vsel %vm76_vm1, %v75_v6, 0.0  ;;  %v73_v9 = vsel %vm67_vm2, %v72_v7, 0.0  ;;  %v88_v12 = vsel %vm76_vm1, %v86_v11, 0.0 }
  0x14   :  { %v81_v10 = vmul.f32 %v77_v8, %v73_v9 }
  0x16   :  { %82 = vadd.xlane.f32.xlu0 %v81_v10 }
  0x89   :  { %v83_v13 = vpop.xlane.xlu0 %82 }
  0x8a   :  { %v84_v14 = vsel %vm80_vm3, %v83_v13, %v73_v9 }
  0x8b   :  { %v92_v15 = vmul.f32 %v88_v12, %v84_v14 }
  0x8d   :  { %93 = vadd.xlane.f32.xlu0 %v92_v15 }
 0x100   :  { %v94_v16 = vpop.xlane.xlu0 %93 }
 0x101   :  { %v95_v17 = vsel %vm91_vm4, %v94_v16, %v84_v14 }
 0x102   :  { %96 = vst [vmem:[#allocation2] sm:$0xff] %v95_v17 }
 0x109   :  { %v99_v18 = vld [vmem:[#allocation2] sm:$0xf] }
 0x10a   :  { %102 = vst [vmem:[#allocation3] sm:$0xf] %v99_v18 }
 0x111   :  { %v157_v19 = vld [vmem:[#allocation3] sm:$0xf] }
 0x112   :  { %158 = vst [vmem:[%s225_s1] sm:$0xf] %v157_v19 }

// kernel: custom-call.47
= control target key start
LH: loop header
LB: loop body
LE: loop exit
PB: predicated region body
PF: predicated region fallthrough
CT: control target
= control target key end

     0   :  { %v183_v0 = vmov 0.0   ;;  %vm40_vm3 = vcmask 7168   ;;  %vm67_vm5 = vcmask 15368   ;;  %vm93_vm6 = vcmask 1047553   ;;  %s205_s0 = inlined_call_operand.vmem [shape: f32[3,3], index: 0, kind: input, shape index: {}]   ;;  %s206_s1 = inlined_call_operand.vmem [shape: f32[3,3], index: 1, kind: output, shape index: {}]  }
   0x1   :  { %39 = vst [vmem:[#allocation2] sm:$0xff] %v183_v0  ;;  %v18_v4 = vld [vmem:[%s205_s0] sm:$0xf]  ;;  %vm94_vm9 = vmand %vm67_vm5, %vm93_vm6  ;;  %vm98_vm11 = vcmask 23568   ;;  %vm124_vm12 = vcmask 1047554  }
   0x2   :  { %19 = vst [vmem:[#allocation1] sm:$0xf] %v18_v4  ;;  %vm125_vm15 = vmand %vm98_vm11, %vm124_vm12 }
   0x8   :  { %v41_v1 = vld [vmem:[#allocation2] ss:$0 sm:$0xff] }
   0x9   :  { %v43_v2 = vmul.f32 %v41_v1, %v41_v1  ;;  %v59_v3 = vmul.f32 0.0, %v41_v1  ;;  %v37_v5 = vld [vmem:[#allocation1] sm:$0xf] }
   0xa   :  { %38 = vst [vmem:[#allocation0] sm:$0xf] %v37_v5 }
   0xb   :  { %44 = vadd.xlane.f32.xlu0 %v43_v2 }
  0x11   :  { %v42_v6 = vld [vmem:[#allocation0] ss:$0 sm:$0xff]  ;;  %v71_v24 = vld [vmem:[#allocation0 + $0x1] ss:$0 sm:$0xff]  ;;  %v102_v42 = vld [vmem:[#allocation0 + $0x2] ss:$0 sm:$0xff] }
  0x12   :  { %v197_v14 = vld [vmem:[#allocation0] sm:$0xff] }
  0x13   :  { %60 = vadd.xlane.f32.xlu0 %v59_v3 }
  0x7e   :  { %v45_v7 = vpop.xlane.xlu0 %44 }
  0x7f   :  { %v46_v8 = vsub.f32 %v42_v6, %v45_v7 }
  0x81   :  { %177 = vrsqrt.f32 %v46_v8  ;;  %vm53_vm1 = vweird.f32 %v46_v8 }
  0x86   :  { %v61_v13 = vpop.xlane.xlu0 %60 }
  0x87   :  { %v178_v9 = vpop.eup %177  ;;  %v62_v16 = vsub.f32 %v197_v14, %v61_v13 }
  0x88   :  { %v48_v10 = vmul.f32 %v178_v9, %v46_v8  ;;  %vm54_vm0 = vweird.f32 %v178_v9 }
  0x89   :  { %vm55_vm2 = vmor %vm53_vm1, %vm54_vm0 }
  0x8a   :  { %v49_v11 = vmul.f32 %v178_v9, %v48_v10 }
  0x8c   :  { %v50_v12 = vmul.f32 0.5, %v49_v11 }
  0x8e   :  { %v51_v15 = vsub.f32 1.5, %v50_v12 }
  0x90   :  { %v52_v17 = vmul.f32 %v178_v9, %v51_v15 }
  0x92   :  { %v56_v18 = vsel %vm55_vm2, %v178_v9, %v52_v17 }
  0x93   :  { %v63_v19 = vmul.f32 %v62_v16, %v56_v18 }
  0x95   :  { %v64_v20 = vsel %vm40_vm3, %v63_v19, 0.0 }
  0x96   :  { %66 = vst [vmem:[#allocation2] sm:$0xff] %v64_v20 }
  0x9d   :  { %v69_v21 = vld [vmem:[#allocation2 + $0x1] ss:$0 sm:$0xff] }
  0x9e   :  { %v72_v22 = vmul.f32 %v69_v21, %v69_v21  ;;  %v88_v23 = vmul.f32 %v69_v21, %v64_v20 }
  0xa0   :  { %73 = vadd.xlane.f32.xlu1 %v72_v22 }
  0xa8   :  { %89 = vadd.xlane.f32.xlu1 %v88_v23 }
 0x113   :  { %v74_v25 = vpop.xlane.xlu1 %73 }
 0x114   :  { %v75_v26 = vsub.f32 %v71_v24, %v74_v25 }
 0x116   :  { %179 = vrsqrt.f32 %v75_v26  ;;  %vm82_vm7 = vweird.f32 %v75_v26 }
 0x11b   :  { %v90_v32 = vpop.xlane.xlu1 %89 }
 0x11c   :  { %v180_v27 = vpop.eup %179  ;;  %v91_v34 = vsub.f32 %v197_v14, %v90_v32 }
 0x11d   :  { %v77_v28 = vmul.f32 %v180_v27, %v75_v26  ;;  %vm83_vm4 = vweird.f32 %v180_v27 }
 0x11e   :  { %vm84_vm8 = vmor %vm82_vm7, %vm83_vm4 }
 0x11f   :  { %v78_v29 = vmul.f32 %v180_v27, %v77_v28 }
 0x121   :  { %v79_v30 = vmul.f32 0.5, %v78_v29 }
 0x123   :  { %v80_v31 = vsub.f32 1.5, %v79_v30 }
 0x125   :  { %v81_v33 = vmul.f32 %v180_v27, %v80_v31 }
 0x127   :  { %v85_v35 = vsel %vm84_vm8, %v180_v27, %v81_v33 }
 0x128   :  { %v92_v36 = vmul.f32 %v91_v34, %v85_v35 }
 0x12a   :  { %v95_v37 = vsel %vm94_vm9, %v92_v36, 0.0 }
 0x12b   :  { %v96_v38 = vadd.f32 %v95_v37, %v64_v20 }
 0x12d   :  { %97 = vst [vmem:[#allocation2] sm:$0xff] %v96_v38 }
 0x134   :  { %v100_v39 = vld [vmem:[#allocation2 + $0x2] ss:$0 sm:$0xff] }
 0x135   :  { %v103_v40 = vmul.f32 %v100_v39, %v100_v39  ;;  %v119_v41 = vmul.f32 %v100_v39, %v96_v38 }
 0x137   :  { %104 = vadd.xlane.f32.xlu2 %v103_v40 }
 0x13f   :  { %120 = vadd.xlane.f32.xlu2 %v119_v41 }
 0x1aa   :  { %v105_v43 = vpop.xlane.xlu2 %104 }
 0x1ab   :  { %v106_v44 = vsub.f32 %v102_v42, %v105_v43 }
 0x1ad   :  { %181 = vrsqrt.f32 %v106_v44  ;;  %vm113_vm13 = vweird.f32 %v106_v44 }
 0x1b2   :  { %v121_v50 = vpop.xlane.xlu2 %120 }
 0x1b3   :  { %v182_v45 = vpop.eup %181  ;;  %v122_v52 = vsub.f32 %v197_v14, %v121_v50 }
 0x1b4   :  { %v108_v46 = vmul.f32 %v182_v45, %v106_v44  ;;  %vm114_vm10 = vweird.f32 %v182_v45 }
 0x1b5   :  { %vm115_vm14 = vmor %vm113_vm13, %vm114_vm10 }
 0x1b6   :  { %v109_v47 = vmul.f32 %v182_v45, %v108_v46 }
 0x1b8   :  { %v110_v48 = vmul.f32 0.5, %v109_v47 }
 0x1ba   :  { %v111_v49 = vsub.f32 1.5, %v110_v48 }
 0x1bc   :  { %v112_v51 = vmul.f32 %v182_v45, %v111_v49 }
 0x1be   :  { %v116_v53 = vsel %vm115_vm14, %v182_v45, %v112_v51 }
 0x1bf   :  { %v123_v54 = vmul.f32 %v122_v52, %v116_v53 }
 0x1c1   :  { %v126_v55 = vsel %vm125_vm15, %v123_v54, 0.0 }
 0x1c2   :  { %v127_v56 = vadd.f32 %v126_v55, %v96_v38 }
 0x1c4   :  { %128 = vst [vmem:[#allocation2] sm:$0xff] %v127_v56 }
 0x1cb   :  { %v131_v57 = vld [vmem:[#allocation2] sm:$0xf] }
 0x1cc   :  { %134 = vst [vmem:[#allocation3] sm:$0xf] %v131_v57 }
 0x1d3   :  { %v151_v58 = vld [vmem:[#allocation3] sm:$0xf] }
 0x1d4   :  { %152 = vst [vmem:[%s206_s1] sm:$0xf] %v151_v58 }

// kernel: custom-call.48
= control target key start
LH: loop header
LB: loop body
LE: loop exit
PB: predicated region body
PF: predicated region fallthrough
CT: control target
= control target key end

     0   :  { %v39_v1 = vlaneseq  ;;  %v168_v20 = vmov -1.0   ;;  %s187_s0 = inlined_call_operand.vmem [shape: f32[1,3,3], index: 0, kind: input, shape index: {}]   ;;  %s188_s1 = inlined_call_operand.vmem [shape: f32[1,3,3], index: 1, kind: output, shape index: {}]  }
   0x1   :  { %v18_v0 = vld [vmem:[%s187_s0] sm:$0xf] }
   0x2   :  { %19 = vst [vmem:[#allocation1] sm:$0xf] %v18_v0  ;;  %v40_v3 = vand.u32 127, %v39_v1  ;;  %v43_v4 = vshrl.u32 %v39_v1, 7 }
   0x4   :  { %vm45_vm0 = vcmp.eq.s32.totalorder %v43_v4, %v40_v3  ;;  %vm41_vm1 = vcmp.lt.s32.totalorder %v40_v3, 3  ;;  %vm50_vm2 = vcmp.ge.s32.totalorder %v43_v4, %v40_v3  ;;  %vm77_vm8 = vcmp.eq.s32.totalorder %v40_v3, 0 }
   0x5   :  { %vm51_vm3 = vmand %vm50_vm2, %vm41_vm1  ;;  %vm74_vm9 = vcmp.eq.s32.totalorder %v40_v3, %v43_v4  ;;  %v78_v21 = vsel %vm77_vm8, 1.0, %v168_v20  ;;  %vm85_vm10 = vcmp.eq.s32.totalorder %v40_v3, 1  ;;  %vm95_vm11 = vcmp.eq.s32.totalorder %v40_v3, 2 }
   0x6   :  { %v79_v22 = vsel %vm74_vm9, %v78_v21, 0.0 }
   0x9   :  { %v37_v2 = vld [vmem:[#allocation1] sm:$0xf] }
   0xa   :  { %38 = vst [vmem:[#allocation0] sm:$0xf] %v37_v2 }
  0x11   :  { %v46_v5 = vld [vmem:[#allocation0] sm:$0xff] }
  0x12   :  { %v47_v6 = vsel %vm45_vm0, %v46_v5, 0.0  ;;  %v52_v15 = vsel %vm51_vm3, %v46_v5, 0.0 }
  0x13   :  { %48 = vadd.xlane.f32.xlu0 %v47_v6 }
  0x86   :  { %v49_v7 = vpop.xlane.xlu0 %48 }
  0x87   :  { %166 = vrcp.f32 %v49_v7  ;;  %v64_v11 = vand.u32 2147483648, %v49_v7  ;;  %v62_v13 = vand.u32 2147483647, %v49_v7  ;;  %vm58_vm5 = vweird.f32 %v49_v7 }
  0x89   :  { %v65_v16 = vor.u32 1.1754944e-38, %v64_v11  ;;  %vm63_vm7 = vcmp.eq.f32.partialorder %v62_v13, 8.507059e+37 }
  0x8d   :  { %v167_v8 = vpop.eup %166 }
  0x8e   :  { %v54_v9 = vmul.f32 %v167_v8, %v49_v7  ;;  %vm59_vm4 = vweird.f32 %v167_v8 }
  0x8f   :  { %vm60_vm6 = vmor %vm58_vm5, %vm59_vm4 }
  0x90   :  { %v55_v10 = vsub.f32 1.0, %v54_v9 }
  0x92   :  { %v56_v12 = vmul.f32 %v167_v8, %v55_v10 }
  0x94   :  { %v57_v14 = vadd.f32 %v167_v8, %v56_v12 }
  0x96   :  { %v61_v17 = vsel %vm60_vm6, %v167_v8, %v57_v14 }
  0x97   :  { %v66_v18 = vsel %vm63_vm7, %v65_v16, %v61_v17 }
  0x98   :  { %v67_v19 = vmul.f32 %v66_v18, %v52_v15 }
  0x9a   :  { %68 = vst [vmem:[#allocation4] sm:$0xff] %v67_v19 }
  0xa1   :  { %v81_v23 = vld [vmem:[#allocation4 + $0x1] ss:$0 sm:$0xff]  ;;  %v91_v26 = vld [vmem:[#allocation4 + $0x2] ss:$0 sm:$0xff] }
  0xa2   :  { %v82_v24 = vxor.u32 2147483648, %v81_v23  ;;  %v92_v28 = vxor.u32 2147483648, %v91_v26 }
  0xa4   :  { %v86_v25 = vmul.f32 %v82_v24, %v79_v22 }
  0xa6   :  { %87 = vadd.xlane.f32.xlu0 %v86_v25 }
 0x119   :  { %v88_v27 = vpop.xlane.xlu0 %87 }
 0x11a   :  { %v89_v29 = vsel %vm85_vm10, %v88_v27, %v79_v22 }
 0x11b   :  { %v96_v30 = vmul.f32 %v92_v28, %v89_v29 }
 0x11d   :  { %97 = vadd.xlane.f32.xlu1 %v96_v30 }
 0x190   :  { %v98_v31 = vpop.xlane.xlu1 %97 }
 0x191   :  { %v99_v32 = vsel %vm95_vm11, %v98_v31, %v89_v29 }
 0x192   :  { %v114_v33 = vmul.f32 %v99_v32, %v66_v18 }
 0x194   :  { %v116_v34 = vsel %vm58_vm5, %v99_v32, %v114_v33 }
 0x195   :  { %117 = vst [vmem:[#allocation2] sm:$0xff] %v116_v34 }
 0x19c   :  { %v120_v35 = vld [vmem:[#allocation2] sm:$0xf] }
 0x19d   :  { %123 = vst [vmem:[#allocation3] sm:$0xf] %v120_v35 }
 0x1a4   :  { %v140_v36 = vld [vmem:[#allocation3] sm:$0xf] }
 0x1a5   :  { %141 = vst [vmem:[%s188_s1] sm:$0xf] %v140_v36 }

// kernel: reverse
= control target key start
LH: loop header
LB: loop body
LE: loop exit
PB: predicated region body
PF: predicated region fallthrough
CT: control target
= control target key end

     0   :  { %v2_v0 = vlaneseq  ;;  %s127_s0 = inlined_call_operand.vmem [shape: f32[3], index: 0, kind: input, shape index: {}]   ;;  %s128_s1 = inlined_call_operand.vmem [shape: f32[3], index: 1, kind: output, shape index: {}]  }
   0x2   :  { %v3_v1 = vsub.s32 2, %v2_v0 }
   0x4   :  { %4 = vset.pattern.permute.xlu0 %v3_v1 }
   0x5   :  { %v45_v2 = vld [vmem:[#allocation1] sm:$0x1]  ;;  %v22_v3 = vld [vmem:[%s127_s0] sm:$0x1]  ;;  %v60_v10 = vshrl.u32 %v2_v0, 7 }
   0x6   :  { %46 = vst [vmem:[#allocation0] sm:$0x1] %v45_v2 }
   0x7   :  { %23 = vst [vmem:[#allocation1 + $0x1] sm:$0x1] %v22_v3  ;;  %vm61_vm0 = vcmp.lt.s32.totalorder %v60_v10, 1 }
   0xd   :  { %v48_v4 = vld [vmem:[#allocation0 + $0x7] ss:$-1 sm:$0xff] }
   0xe   :  { %v49_v5 = vrot.slane %v48_v4, 7  ;;  %v42_v6 = vld [vmem:[#allocation1 + $0x1] sm:$0x1] }
   0xf   :  { %44 = vst [vmem:[#allocation0 + $0x8] sm:$0x1] %v42_v6 }
  0x10   :  { %50 = vperm.xlu0 %4, %v49_v5  }
  0x16   :  { %v55_v7 = vld [vmem:[#allocation0 + $0xf] ss:$-1 sm:$0xff] }
  0x17   :  { %v56_v8 = vrot.slane %v55_v7, 7 }
  0x19   :  { %57 = vperm.xlu0 %4, %v56_v8  }
  0x82   :  { %v51_v9 = vpop.permute.xlu0 %50 }
  0x83   :  { %52 = vst [vmem:[#allocation2] sm:$0xff] %v51_v9 }
  0x8b   :  { %v58_v11 = vpop.permute.xlu0 %57 }
  0x8c   :  { %62 = vst.msk [vmem:[#allocation2] sm:$0xff] %vm61_vm0, %v58_v11 }
  0x93   :  { %v65_v12 = vld [vmem:[#allocation2] sm:$0x1] }
  0x94   :  { %68 = vst [vmem:[#allocation3] sm:$0x1] %v65_v12 }
  0x9b   :  { %v85_v13 = vld [vmem:[#allocation3] sm:$0x1] }
  0x9c   :  { %86 = vst [vmem:[%s128_s1] sm:$0x1] %v85_v13 }

// kernel: custom-call.23
= control target key start
LH: loop header
LB: loop body
LE: loop exit
PB: predicated region body
PF: predicated region fallthrough
CT: control target
= control target key end

     0   :  { %v268_v3 = vlaneseq  ;;  %v1713_v7 = vmov 0.0   ;;  %s257_s17 = smov [#allocation22]  ;;  %s260_s18 = smov [#allocation23]  ;;  %s2002_s0 = inlined_call_operand.vmem [shape: f32[2,2], index: 0, kind: input, shape index: {}]   ;;  %s2003_s1 = inlined_call_operand.vmem [shape: f32[2,2], index: 1, kind: input, shape index: {}]   ;;  %s2004_s2 = inlined_call_operand.vmem [shape: f32[2,2], index: 2, kind: input, shape index: {}]   ;;  %s2005_s3 = inlined_call_operand.vmem [shape: f32[2,2], index: 3, kind: input, shape index: {}]   ;;  %s2006_s4 = inlined_call_operand.vmem [shape: f32[2], index: 4, kind: output, shape index: {0}]   ;;  %s2007_s5 = inlined_call_operand.vmem [shape: f32[2], index: 5, kind: output, shape index: {1}]   ;;  %s2008_s6 = inlined_call_operand.vmem [shape: f32[2,2], index: 6, kind: output, shape index: {2}]   ;;  %s2009_s7 = inlined_call_operand.vmem [shape: f32[2,2], index: 7, kind: output, shape index: {3}]   ;;  %s2010_s8 = inlined_call_operand.vmem [shape: f32[2,2], index: 8, kind: output, shape index: {4}]   ;;  %s2011_s9 = inlined_call_operand.vmem [shape: f32[2,2], index: 9, kind: output, shape index: {5}]  }
   0x1   :  { %v65_v0 = vld [vmem:[%s2002_s0] sm:$0x3]  ;;  %263 = vst [vmem:[#allocation12] sm:$0xff] %v1713_v7  ;;  %s267_s0 = smov [#allocation12]  ;;  %s1411_s19 = smov [#allocation20] }
   0x2   :  { %v121_v1 = vld [vmem:[%s2003_s1] sm:$0x3]  ;;  %66 = vst [vmem:[#allocation1] sm:$0x3] %v65_v0  ;;  %v1778_v5 = vand.u32 127, %v268_v3  ;;  %v1780_v6 = vshrl.u32 %v268_v3, 7 }
   0x3   :  { %v177_v2 = vld [vmem:[%s2004_s2] sm:$0x3]  ;;  %122 = vst [vmem:[#allocation3] sm:$0x3] %v121_v1  ;;  %s280_s1 = smov [#allocation18]  ;;  %s251_s2 = smov [#allocation20] }
   0x4   :  { %v233_v4 = vld [vmem:[%s2005_s3] sm:$0x3]  ;;  %178 = vst [vmem:[#allocation5] sm:$0x3] %v177_v2  ;;  %v270_v5 = vmov %v1778_v5  ;;  %v273_v6 = vmov %v1780_v6  ;;  %s254_s3 = smov [#allocation21]  ;;  %vm1415_vm2 = vcmp.lt.s32.totalorder %v1778_v5, 2 }
   0x5   :  { %234 = vst [vmem:[#allocation7] sm:$0x3] %v233_v4  ;;  %vm277_vm0 = vcmp.eq.s32.totalorder %v273_v6, %v270_v5  ;;  %v283_v5 = vmov %v1778_v5  ;;  %v286_v6 = vmov %v1780_v6  ;;  %s1428_s20 = smov [#allocation21]  ;;  %s1445_s21 = smov [#allocation22] }
   0x6   :  { %264 = vst [vmem:[#allocation14] sm:$0xff] %v1713_v7  ;;  %vm290_vm1 = vcmp.eq.s32.totalorder %v286_v6, %v283_v5  ;;  %v1407_v5 = vmov %v1778_v5  ;;  %v1410_v6 = vmov %v1780_v6  ;;  %s1462_s22 = smov [#allocation23] }
   0x7   :  { %265 = vst [vmem:[#allocation16] sm:$0xff] %v1713_v7  ;;  %v1424_v5 = vmov %v1778_v5  ;;  %v1427_v6 = vmov %v1780_v6  ;;  %vm1420_vm3 = vcmp.eq.s32.totalorder %v1410_v6, %v1407_v5 }
   0x8   :  { %266 = vst [vmem:[#allocation18] sm:$0xff] %v1713_v7  ;;  %v274_v12 = vld [vmem:[%s267_s0] sm:$0x3]  ;;  %v1441_v5 = vmov %v1778_v5  ;;  %v1444_v6 = vmov %v1780_v6 }
   0x9   :  { %v237_v8 = vld [vmem:[#allocation1] sm:$0x3]  ;;  %v278_v13 = vsel %vm277_vm0, 1.0, %v274_v12  ;;  %v1458_v5 = vmov %v1778_v5  ;;  %v1461_v6 = vmov %v1780_v6 }
   0xa   :  { %238 = vst [vmem:[#allocation0] sm:$0x3] %v237_v8  ;;  %v241_v9 = vld [vmem:[#allocation3] sm:$0x3]  ;;  %vm1471_vm4 = vcmp.eq.s32.totalorder %v1461_v6, %v1458_v5 }
   0xb   :  { %242 = vst [vmem:[#allocation2] sm:$0x3] %v241_v9  ;;  %v245_v10 = vld [vmem:[#allocation5] sm:$0x3] }
   0xc   :  { %246 = vst [vmem:[#allocation4] sm:$0x3] %v245_v10  ;;  %v249_v11 = vld [vmem:[#allocation7] sm:$0x3] }
   0xd   :  { %250 = vst [vmem:[#allocation6] sm:$0x3] %v249_v11 }
   0xe   :  { %279 = vst [vmem:[%s267_s0] sm:$0x3] %v278_v13 }
   0xf   :  { %v287_v14 = vld [vmem:[%s280_s1] sm:$0x3] }
  0x10   :  { %v291_v18 = vsel %vm290_vm1, 1.0, %v287_v14 }
  0x11   :  { %v252_v15 = vld [vmem:[#allocation0] sm:$0xff]  ;;  %292 = vst [vmem:[%s280_s1] sm:$0x3] %v291_v18 }
  0x12   :  { %253 = vst [vmem:[%s251_s2] sm:$0xff] %v252_v15  ;;  %v255_v16 = vld [vmem:[#allocation2] sm:$0xff] }
  0x13   :  { %256 = vst [vmem:[%s254_s3] sm:$0xff] %v255_v16  ;;  %v258_v17 = vld [vmem:[#allocation4] sm:$0xff] }
  0x14   :  { %259 = vst [vmem:[%s257_s17] sm:$0xff] %v258_v17  ;;  %v261_v19 = vld [vmem:[#allocation6] sm:$0xff] }
  0x15   :  { %262 = vst [vmem:[%s260_s18] sm:$0xff] %v261_v19 }
  0x19   :  { %v1417_v20 = vld [vmem:[%s1411_s19] sm:$0x3] }
  0x1a   :  { %v1434_v21 = vld [vmem:[%s1428_s20] sm:$0x3]  ;;  %v1418_v22 = vsel %vm1415_vm2, %v1417_v20, 0.0 }
  0x1b   :  { %v1435_v23 = vsel %vm1415_vm2, %v1434_v21, 0.0  ;;  %v1451_v24 = vld [vmem:[%s1445_s21] sm:$0x3]  ;;  %v1419_v26 = vmul.f32 %v1418_v22, %v1418_v22 }
  0x1c   :  { %v1468_v25 = vld [vmem:[%s1462_s22] sm:$0x3]  ;;  %v1436_v27 = vmul.f32 %v1435_v23, %v1435_v23  ;;  %v1452_v28 = vsel %vm1415_vm2, %v1451_v24, 0.0 }
  0x1d   :  { %v1469_v29 = vsel %vm1415_vm2, %v1468_v25, 0.0  ;;  %v1453_v30 = vmul.f32 %v1452_v28, %v1452_v28  ;;  %v1421_v33 = vsel %vm1420_vm3, 0.0, %v1419_v26 }
  0x1e   :  { %v1438_v31 = vadd.f32 %v1436_v27, %v1419_v26  ;;  %v1470_v32 = vmul.f32 %v1469_v29, %v1469_v29  ;;  %v1437_v35 = vadd.f32 %v1436_v27, %v1421_v33 }
  0x20   :  { %v1455_v34 = vadd.f32 %v1453_v30, %v1438_v31  ;;  %v1454_v37 = vadd.f32 %v1453_v30, %v1437_v35  ;;  %v1472_v38 = vsel %vm1471_vm4, 0.0, %v1470_v32 }
  0x22   :  { %v1474_v36 = vadd.f32 %v1470_v32, %v1455_v34  ;;  %v1473_v39 = vadd.f32 %v1472_v38, %v1454_v37 }
  0x24   :  { %1475 = vadd.xlane.f32.xlu0 %v1474_v36 }
  0x2c   :  { %1483 = vadd.xlane.f32.xlu0 %v1473_v39 }
  0x97   :  { %v1476_v40 = vpop.xlane.xlu0 %1475 }
  0x98   :  { %v1477_v41 = vrot.slane %v1476_v40, 4 }
  0x9a   :  { %v1478_v42 = vadd.f32 %v1477_v41, %v1476_v40 }
  0x9c   :  { %v1479_v43 = vrot.slane %v1478_v42, 2 }
  0x9e   :  { %v1480_v47 = vadd.f32 %v1479_v43, %v1478_v42 }
  0x9f   :  { %v1484_v44 = vpop.xlane.xlu0 %1483 }
  0xa0   :  { %v1485_v45 = vrot.slane %v1484_v44, 4  ;;  %v1481_v50 = vrot.slane %v1480_v47, 1 }
  0xa2   :  { %v1486_v46 = vadd.f32 %v1485_v45, %v1484_v44  ;;  %v1482_v53 = vadd.f32 %v1481_v50, %v1480_v47 }
  0xa4   :  { %v1487_v48 = vrot.slane %v1486_v46, 2 }
  0xa6   :  { %v1488_v49 = vadd.f32 %v1487_v48, %v1486_v46 }
  0xa8   :  { %v1489_v51 = vrot.slane %v1488_v49, 1 }
  0xaa   :  { %v1490_v52 = vadd.f32 %v1489_v51, %v1488_v49 }
  0xac   :  { %1662 = vpush %v1490_v52 }
  0xad   :  { %1664 = vpush %v1482_v53 }
  0xdd   :  { %s1663_s23 = spop %1662 }
  0xde   :  { %s1665_s24 = spop %1664 }
  0xdf   :  { %s1493_s25 = smul.f32 1e-10, %s1665_s24 }
  0xe1   :  { %p1494_p0 = scmp.le.f32.partialorder %s1663_s23, %s1493_s25 }
  0xe2   :  { %s1803_s26 = smov (!%p1494_p0), 0  }
  0xe3   :  { %1497 = sbr.rel (%p1494_p0) target bundleno = 885 (0x375), region = 440 }
  0xe8 LB: > { %s1808_s27 = smov 0   ;;  %s1707_s26 = sphi %s1803_s26, %s2012_s26  }
  0xe9 LB: >> { %s397_s28 = smov [#allocation20]  ;;  %v401_v5 = vmov %v1778_v5  ;;  %v404_v6 = vmov %v1780_v6  ;;  %s417_s29 = smov [#allocation21]  ;;  %s1711_s27 = sphi %s1808_s27, %s396_s27  }
  0xea   : >> { %v421_v5 = vmov %v1778_v5  ;;  %v424_v6 = vmov %v1780_v6  ;;  %v405_v54 = vld [vmem:[%s397_s28] sm:$0x3]  ;;  %vm408_vm5 = vcmp.eq.s32.totalorder %v404_v6, %v401_v5  ;;  %s437_s30 = smov [#allocation23]  ;;  %s398_s10 = smov [#allocation24] }
  0xeb   : >> { %vm428_vm6 = vcmp.eq.s32.totalorder %v424_v6, %v421_v5  ;;  %v441_v5 = vmov %v1778_v5  ;;  %v444_v6 = vmov %v1780_v6  ;;  %v409_v55 = vsel %vm408_vm5, %v405_v54, 0.0  ;;  %v425_v56 = vld [vmem:[%s417_s29] sm:$0x3]  ;;  %s418_s11 = smov [#allocation25]  ;;  %s438_s12 = smov [#allocation26] }
  0xec   : >> { %vm448_vm7 = vcmp.eq.s32.totalorder %v444_v6, %v441_v5  ;;  %v410_v57 = vrot.slane %v409_v55, 4  ;;  %v429_v58 = vsel %vm428_vm6, %v425_v56, 0.0  ;;  %v445_v59 = vld [vmem:[%s437_s30] sm:$0x3]  ;;  %s461_s13 = smov [#allocation25]  ;;  %s459_s14 = smov [#allocation24]  ;;  %v550_v5 = vmov %v1778_v5 }
  0xed   : >> { %v430_v60 = vrot.slane %v429_v58, 4  ;;  %v449_v61 = vsel %vm448_vm7, %v445_v59, 0.0  ;;  %s463_s15 = smov [#allocation26]  ;;  %s538_s16 = smov [#allocation27]  ;;  %v553_v6 = vmov %v1780_v6 }
  0xee   : >> { %v411_v62 = vadd.f32 %v410_v57, %v409_v55  ;;  %v450_v63 = vrot.slane %v449_v61, 4  ;;  %s540_s0 = smov [#allocation28]  ;;  %s457_s1 = smov [#allocation29] }
  0xef   : >> { %v431_v0 = vadd.f32 %v430_v60, %v429_v58  ;;  %s458_s2 = smov [#allocation30]  ;;  %s542_s1 = smov %s457_s1 }
  0xf0   : >> { %v412_v1 = vrot.slane %v411_v62, 2  ;;  %v451_v2 = vadd.f32 %v450_v63, %v449_v61  ;;  %s544_s2 = smov %s458_s2  ;;  %s546_s3 = smov [#allocation29] }
  0xf1   : >> { %v432_v3 = vrot.slane %v431_v0, 2  ;;  %s561_s17 = smov [#allocation30]  ;;  %s559_s18 = smov [#allocation31] }
  0xf2   : >> { %v413_v4 = vadd.f32 %v412_v1, %v411_v62  ;;  %v452_v7 = vrot.slane %v451_v2, 2  ;;  %s574_s19 = smov [#allocation32]  ;;  %s576_s20 = smov [#allocation31] }
  0xf3   : >> { %v433_v8 = vadd.f32 %v432_v3, %v431_v0  ;;  %s1828_s21 = smov [#allocation20]  ;;  %s1830_s22 = smov [#allocation21] }
  0xf4   : >> { %v414_v9 = vrot.slane %v413_v4, 1  ;;  %v453_v10 = vadd.f32 %v452_v7, %v451_v2  ;;  %s1832_s23 = smov [#allocation22]  ;;  %s800_s24 = smov [#allocation31] }
  0xf5   : >> { %v434_v11 = vrot.slane %v433_v8, 1  ;;  %s1834_s25 = smov [#allocation12]  ;;  %s1836_s28 = smov [#allocation14] }
  0xf6   : >> { %v415_v12 = vadd.f32 %v414_v9, %v413_v4  ;;  %v454_v13 = vrot.slane %v453_v10, 1  ;;  %s1838_s29 = smov [#allocation23]  ;;  %s1841_s30 = smov [#allocation16] }
  0xf7   : >> { %v435_v14 = vadd.f32 %v434_v11, %v433_v8  ;;  %s396_s27 = sadd.s32 1, %s1711_s27  }
  0xf8   : >> { %416 = vst [vmem:[%s398_s10] sm:$0x1] %v415_v12  ;;  %v455_v15 = vadd.f32 %v454_v13, %v453_v10  ;;  %s578_s10 = smov [#allocation32]  ;;  %p393_p1 = scmp.ge.s32.totalorder %s396_s27, 3  }
  0xf9   : >> { %436 = vst [vmem:[%s418_s11] sm:$0x1] %v435_v14  ;;  %s802_s11 = smov [#allocation32] }
  0xfa   : >> { %456 = vst [vmem:[%s438_s12] sm:$0x1] %v455_v15  ;;  %s1844_s12 = smov [#allocation18] }
  0xff   : >> { %v460_v23 = vld [vmem:[%s459_s14] sm:$0xff]  ;;  %s604_s14 = smov [#allocation29] }
 0x100   : >> { %v1819_v16 = vld [vmem:[%s461_s13] sm:$0xff]  ;;  %v514_v47 = vand.u32 2147483647, %v460_v23  ;;  %s1855_s13 = smov [#allocation12] }
 0x101   : >> { %v466_v17 = vmul.f32 2.0, %v1819_v16  ;;  %v464_v24 = vld [vmem:[%s463_s15] sm:$0xff]  ;;  %v515_v55 = vand.u32 2147483647, %v1819_v16  ;;  %s606_s15 = smov [#allocation30] }
 0x102   : >> { %v465_v27 = vsub.f32 %v464_v24, %v460_v23  ;;  %v516_v48 = vand.u32 2147483647, %v464_v24 }
 0x103   : >> { %1689 = vrcp.f32 %v466_v17  ;;  %v478_v20 = vand.u32 2147483648, %v466_v17  ;;  %vm472_vm8 = vweird.f32 %v466_v17  ;;  %v476_v22 = vand.u32 2147483647, %v466_v17 }
 0x104   : >> { %v517_v50 = vmin.f32 %v514_v47, %v516_v48 }
 0x105   : >> { %v479_v26 = vor.u32 1.1754944e-38, %v478_v20  ;;  %vm477_vm11 = vcmp.eq.f32.partialorder %v476_v22, 8.507059e+37  ;;  %v585_v20 = vld [vmem:[%s1830_s22] sm:$0x3] }
 0x106   : >> { %v518_v56 = vmul.f32 1.1920929e-08, %v517_v50 }
 0x108   : >> { %vm519_vm4 = vcmp.le.f32.partialorder %v515_v55, %v518_v56 }
 0x109   : >> { %v1690_v18 = vpop.eup %1689 }
 0x10a   : >> { %v468_v19 = vmul.f32 %v1690_v18, %v466_v17  ;;  %vm473_vm9 = vweird.f32 %v1690_v18 }
 0x10b   : >> { %vm474_vm10 = vmor %vm472_vm8, %vm473_vm9  ;;  %vm555_vm8 = vcmp.eq.s32.totalorder %v553_v6, %v550_v5  ;;  %v565_v5 = vmov %v1778_v5  ;;  %v568_v6 = vmov %v1780_v6 }
 0x10c   : >> { %v469_v21 = vsub.f32 1.0, %v468_v19  ;;  %vm570_vm9 = vcmp.eq.s32.totalorder %v568_v6, %v565_v5  ;;  %v636_v5 = vmov %v1778_v5 }
 0x10d   : >> { %v677_v5 = vmov %v1778_v5 }
 0x10e   : >> { %v470_v25 = vmul.f32 %v1690_v18, %v469_v21  ;;  %v586_v21 = vld [vmem:[%s1832_s23] sm:$0x3]  ;;  %v663_v5 = vmov %v1778_v5 }
 0x110   : >> { %v471_v28 = vadd.f32 %v1690_v18, %v470_v25 }
 0x112   : >> { %v475_v29 = vsel %vm474_vm10, %v1690_v18, %v471_v28  ;;  %v810_v28 = vld [vmem:[%s1841_s30] sm:$0x3]  ;;  %vm760_vm10 = vcmp.eq.s32.totalorder %v1780_v6, 0 }
 0x113   : >> { %v480_v30 = vsel %vm477_vm11, %v479_v26, %v475_v29  ;;  %v584_v26 = vld [vmem:[%s1828_s21] sm:$0x3]  ;;  %vm772_vm11 = vcmp.eq.s32.totalorder %v1780_v6, 1  ;;  %v639_v6 = vmov %v1780_v6 }
 0x114   : >> { %v481_v31 = vmul.f32 %v480_v30, %v465_v27  ;;  %v587_v27 = vld [vmem:[%s1838_s29] sm:$0x3]  ;;  %v680_v6 = vmov %v1780_v6 }
 0x115   : >> { %v666_v6 = vmov %v1780_v6 }
 0x116   : >> { %v483_v32 = vmul.f32 %v481_v31, %v481_v31  ;;  %vm482_vm14 = vcmp.ge.f32.partialorder %v481_v31, 0.0 }
 0x118   : >> { %v484_v33 = vadd.f32 1.0, %v483_v32 }
 0x11a   : >> { %1691 = vrsqrt.f32 %v484_v33  ;;  %vm492_vm12 = vcmp.eq.f32.partialorder %v484_v33, inf  ;;  %v495_v40 = vand.u32 2147483648, %v484_v33  ;;  %vm494_vm13 = vcmp.eq.f32.partialorder %v484_v33, 0.0 }
 0x120   : >> { %v1692_v34 = vpop.eup %1691 }
 0x121   : >> { %v486_v35 = vmul.f32 %v1692_v34, %v484_v33 }
 0x123   : >> { %v487_v36 = vmul.f32 %v1692_v34, %v486_v35 }
 0x125   : >> { %v488_v37 = vmul.f32 0.5, %v487_v36 }
 0x127   : >> { %v489_v38 = vsub.f32 1.5, %v488_v37 }
 0x129   : >> { %v490_v39 = vmul.f32 %v1692_v34, %v489_v38 }
 0x12b   : >> { %v491_v41 = vmul.f32 %v490_v39, %v484_v33 }
 0x12d   : >> { %v493_v42 = vsel %vm492_vm12, %v484_v33, %v491_v41  ;;  %v811_v33 = vld [vmem:[%s1844_s12] sm:$0x3]  ;;  %vm644_vm12 = vcmp.eq.s32.totalorder %v639_v6, %v636_v5  ;;  %v650_v5 = vmov %v1778_v5  ;;  %v653_v6 = vmov %v1780_v6 }
 0x12e   : >> { %v496_v43 = vsel %vm494_vm13, %v495_v40, %v493_v42  ;;  %vm685_vm13 = vcmp.eq.s32.totalorder %v680_v6, %v677_v5 }
 0x12f   : >> { %v497_v44 = vxor.u32 2147483648, %v496_v43 }
 0x131   : >> { %v498_v45 = vsel %vm482_vm14, %v496_v43, %v497_v44  ;;  %vm670_vm14 = vcmp.eq.s32.totalorder %v666_v6, %v663_v5 }
 0x132   : >> { %v499_v46 = vadd.f32 %v498_v45, %v481_v31 }
 0x134   : >> { %1693 = vrcp.f32 %v499_v46  ;;  %v511_v52 = vand.u32 2147483648, %v499_v46  ;;  %vm505_vm15 = vweird.f32 %v499_v46  ;;  %v509_v54 = vand.u32 2147483647, %v499_v46 }
 0x136   : >> { %v512_v58 = vor.u32 1.1754944e-38, %v511_v52  ;;  %vm510_vm3 = vcmp.eq.f32.partialorder %v509_v54, 8.507059e+37 }
 0x13a   : >> { %v1694_v49 = vpop.eup %1693 }
 0x13b   : >> { %v501_v51 = vmul.f32 %v1694_v49, %v499_v46  ;;  %vm506_vm0 = vweird.f32 %v1694_v49 }
 0x13c   : >> { %vm507_vm1 = vmor %vm505_vm15, %vm506_vm0  ;;  %vm657_vm15 = vcmp.eq.s32.totalorder %v653_v6, %v650_v5  ;;  %vm703_vm0 = vcmp.eq.s32.totalorder %v1778_v5, 1  ;;  %v300_v6 = vmov (%p393_p1), %v1780_v6 }
 0x13d   : >> { %v502_v53 = vsub.f32 1.0, %v501_v51 }
 0x13f   : >> { %v503_v57 = vmul.f32 %v1694_v49, %v502_v53 }
 0x141   : >> { %v504_v59 = vadd.f32 %v1694_v49, %v503_v57 }
 0x143   : >> { %v508_v60 = vsel %vm507_vm1, %v1694_v49, %v504_v59  ;;  %vm699_vm1 = vcmp.eq.s32.totalorder %v1778_v5, 0  ;;  %v297_v5 = vmov (%p393_p1), %v1778_v5 }
 0x144   : >> { %v513_v61 = vsel %vm510_vm3, %v512_v58, %v508_v60  ;;  %vm312_vm3 = vcmp.eq.s32.totalorder (%p393_p1), %v300_v6, %v297_v5  ;;  %v316_v5 = vmov (%p393_p1), %v1778_v5  ;;  %v319_v6 = vmov (%p393_p1), %v1780_v6 }
 0x145   : >> { %v520_v62 = vsel %vm519_vm4, 0.0, %v513_v61  ;;  %v333_v5 = vmov (%p393_p1), %v1778_v5  ;;  %v336_v6 = vmov (%p393_p1), %v1780_v6 }
 0x146   : >> { %v521_v63 = vmul.f32 %v520_v62, %v520_v62  ;;  %v534_v0 = vmul.f32 %v520_v62, %v1819_v16  ;;  %v350_v5 = vmov (%p393_p1), %v1778_v5  ;;  %v353_v6 = vmov (%p393_p1), %v1780_v6 }
 0x147   : > { %vm365_vm4 = vcmp.eq.s32.totalorder (%p393_p1), %v353_v6, %v350_v5 }
 0x148   : >> { %v522_v1 = vadd.f32 1.0, %v521_v63  ;;  %v535_v2 = vsub.f32 %v460_v23, %v534_v0  ;;  %v537_v3 = vadd.f32 %v534_v0, %v464_v24  ;;  %v808_v23 = vld [vmem:[%s1834_s25] sm:$0x3] }
 0x149   : >> { %v809_v24 = vld [vmem:[%s1836_s28] sm:$0x3] }
 0x14a   : >> { %1695 = vrsqrt.f32 %v522_v1  ;;  %539 = vst [vmem:[%s538_s16] sm:$0xff] %v535_v2  ;;  %vm529_vm5 = vweird.f32 %v522_v1  ;;  %s1860_s16 = smov [#allocation22] }
 0x14b   : >> { %541 = vst [vmem:[%s540_s0] sm:$0xff] %v537_v3  ;;  %s1862_s0 = smov [#allocation21] }
 0x150   : >> { %v1696_v4 = vpop.eup %1695 }
 0x151   : >> { %v524_v7 = vmul.f32 %v1696_v4, %v522_v1  ;;  %vm530_vm6 = vweird.f32 %v1696_v4 }
 0x152   : >> { %vm531_vm7 = vmor %vm529_vm5, %vm530_vm6 }
 0x153   : >> { %v525_v8 = vmul.f32 %v1696_v4, %v524_v7 }
 0x155   : >> { %v526_v9 = vmul.f32 0.5, %v525_v8 }
 0x157   : >> { %v527_v10 = vsub.f32 1.5, %v526_v9 }
 0x159   : >> { %v528_v11 = vmul.f32 %v1696_v4, %v527_v10 }
 0x15b   : >> { %v532_v12 = vsel %vm531_vm7, %v1696_v4, %v528_v11 }
 0x15c   : >> { %543 = vst [vmem:[%s542_s1] sm:$0xff] %v532_v12  ;;  %v533_v13 = vmul.f32 %v532_v12, %v520_v62  ;;  %s829_s1 = smov [#allocation16] }
 0x15e   : >> { %545 = vst [vmem:[%s544_s2] sm:$0xff] %v533_v13  ;;  %s1864_s2 = smov [#allocation14] }
 0x163   : >> { %v547_v14 = vld [vmem:[%s546_s3] ss:$0 sm:$0xff]  ;;  %s1869_s3 = smov [#allocation18] }
 0x164   : >> { %v556_v15 = vsel %vm555_vm8, %v547_v14, 0.0  ;;  %v605_v56 = vld [vmem:[%s604_s14] ss:$0 sm:$0xff]  ;;  %s752_s14 = smov [#allocation20] }
 0x165   : >> { %557 = vadd.xlane.f32.xlu0 %v556_v15  ;;  %v562_v16 = vld [vmem:[%s561_s17] ss:$0 sm:$0xff]  ;;  %s1872_s17 = smov [#allocation20] }
 0x166   : >> { %v571_v17 = vsel %vm570_vm9, %v562_v16, 0.0  ;;  %v607_v57 = vld [vmem:[%s606_s15] ss:$0 sm:$0xff]  ;;  %s777_s15 = smov [#allocation23] }
 0x16d   : >> { %572 = vadd.xlane.f32.xlu0 %v571_v17 }
 0x1d8   : >> { %v558_v18 = vpop.xlane.xlu0 %557 }
 0x1d9   : >> { %560 = vst [vmem:[%s559_s18] sm:$0xff] %v558_v18  ;;  %s611_s18 = smov [#allocation23] }
 0x1e0   : >> { %v573_v19 = vpop.xlane.xlu0 %572  ;;  %v577_v22 = vld [vmem:[%s576_s20] sm:$0xff]  ;;  %s674_s20 = smov [#allocation28] }
 0x1e1   : >> { %575 = vst [vmem:[%s574_s19] sm:$0xff] %v573_v19  ;;  %v801_v25 = vld [vmem:[%s800_s24] sm:$0xff]  ;;  %v591_v29 = vmul.f32 %v585_v20, %v577_v22  ;;  %v595_v30 = vmul.f32 %v586_v21, %v577_v22  ;;  %v588_v50 = vmul.f32 %v584_v26, %v577_v22  ;;  %v598_v52 = vmul.f32 %v587_v27, %v577_v22  ;;  %s633_s19 = smov [#allocation27]  ;;  %s647_s24 = smov [#allocation21] }
 0x1e2   : >> { %v812_v34 = vmul.f32 %v808_v23, %v801_v25  ;;  %v815_v35 = vmul.f32 %v809_v24, %v801_v25  ;;  %v819_v42 = vmul.f32 %v810_v28, %v801_v25  ;;  %v822_v46 = vmul.f32 %v811_v33, %v801_v25 }
 0x1e8   : >> { %v579_v31 = vld [vmem:[%s578_s10] sm:$0xff]  ;;  %s689_s10 = smov [#allocation21] }
 0x1e9   : >> { %v803_v32 = vld [vmem:[%s802_s11] sm:$0xff]  ;;  %v592_v36 = vmul.f32 %v587_v27, %v579_v31  ;;  %v594_v37 = vmul.f32 %v584_v26, %v579_v31  ;;  %v589_v43 = vmul.f32 %v586_v21, %v579_v31  ;;  %v597_v47 = vmul.f32 %v585_v20, %v579_v31  ;;  %s1715_s11 = smov 127  }
 0x1ea   : >> { %v813_v38 = vmul.f32 %v810_v28, %v803_v32  ;;  %v816_v39 = vmul.f32 %v811_v33, %v803_v32  ;;  %v818_v40 = vmul.f32 %v808_v23, %v803_v32  ;;  %v821_v41 = vmul.f32 %v809_v24, %v803_v32  ;;  %v640_v26 = vld [vmem:[%s633_s19] ss:$0 sm:$0xff] }
 0x1eb   : >> { %v593_v44 = vsub.f32 %v591_v29, %v592_v36  ;;  %v596_v45 = vadd.f32 %v595_v30, %v594_v37  ;;  %v590_v54 = vsub.f32 %v588_v50, %v589_v43  ;;  %v599_v55 = vadd.f32 %v598_v52, %v597_v47  ;;  %v681_v27 = vld [vmem:[%s674_s20] ss:$0 sm:$0xff] }
 0x1ec   : >> { %v814_v48 = vsub.f32 %v812_v34, %v813_v38  ;;  %v817_v49 = vsub.f32 %v815_v35, %v816_v39  ;;  %v820_v51 = vadd.f32 %v819_v42, %v818_v40  ;;  %v823_v53 = vadd.f32 %v822_v46, %v821_v41 }
 0x1ed   : >> { %601 = vst [vmem:[%s1830_s22] sm:$0x3] %v593_v44  ;;  %s673_s22 = smov [#allocation23] }
 0x1ee   : >> { %602 = vst [vmem:[%s1832_s23] sm:$0x3] %v596_v45  ;;  %s660_s23 = smov [#allocation22] }
 0x1ef   : >> { %824 = vst [vmem:[%s1834_s25] sm:$0x3] %v814_v48  ;;  %s1909_s25 = smov [#allocation20] }
 0x1f0   : >> { %825 = vst [vmem:[%s1836_s28] sm:$0x3] %v817_v49  ;;  %s1911_s28 = smov [#allocation23] }
 0x1f1   : >> { %826 = vst [vmem:[%s1841_s30] sm:$0x3] %v820_v51  ;;  %s1714_s30 = smov 1  }
 0x1f2   : >> { %827 = vst [vmem:[%s1844_s12] sm:$0x3] %v823_v53  ;;  %s1923_s12 = smov [#allocation21] }
 0x1f3   : >> { %600 = vst [vmem:[%s1828_s21] sm:$0x3] %v590_v54  ;;  %s632_s21 = smov [#allocation20] }
 0x1f4   : >> { %603 = vst [vmem:[%s1838_s29] sm:$0x3] %v599_v55  ;;  %v613_v59 = vld [vmem:[%s1862_s0] sm:$0x3]  ;;  %s1913_s29 = smov [#allocation22] }
 0x1f5   : >> { %v614_v58 = vld [vmem:[%s1860_s16] sm:$0x3]  ;;  %v617_v10 = vmul.f32 %v613_v59, %v607_v57  ;;  %v620_v16 = vmul.f32 %v613_v59, %v605_v56 }
 0x1f6   : >> { %v830_v60 = vld [vmem:[%s1855_s13] ss:$0 sm:$0xff]  ;;  %v1637_v62 = vld [vmem:[%s1855_s13 + $0x1] ss:$0 sm:$0xff]  ;;  %v625_v13 = vmul.f32 %v614_v58, %v607_v57  ;;  %v622_v14 = vmul.f32 %v614_v58, %v605_v56 }
 0x1f7   : >> { %v1636_v61 = vld [vmem:[%s1855_s13 - $0x1] sm:$0x2]  ;;  %v1641_v2 = vld [vmem:[%s1864_s2 + $0x1] ss:$0 sm:$0xff] }
 0x1f8   : >> { %v837_v63 = vsel %vm760_vm10, %v830_v60, %v1636_v61  ;;  %v854_v0 = vld [vmem:[%s1864_s2] ss:$0 sm:$0xff]  ;;  %v1639_v4 = vld [vmem:[%s829_s1 + $0x1] sm:$0x1] }
 0x1f9   : >> { %v1640_v1 = vld [vmem:[%s1864_s2 - $0x1] sm:$0x2]  ;;  %840 = vst [vmem:[%s1855_s13] sm:$0x3] %v837_v63  ;;  %v849_v8 = vsel %vm772_vm11, %v1637_v62, %v1639_v4  ;;  %v1643_v9 = vld [vmem:[%s1869_s3 + $0x1] sm:$0x1] }
 0x1fa   : >> { %v841_v3 = vld [vmem:[%s829_s1] ss:$0 sm:$0xff]  ;;  %v861_v7 = vsel %vm760_vm10, %v854_v0, %v1640_v1  ;;  %v873_v12 = vsel %vm772_vm11, %v1641_v2, %v1643_v9 }
 0x1fb   : >> { %1638 = vst [vmem:[%s1855_s13 + $0x1] sm:$0x1] %v841_v3  ;;  %v865_v11 = vld [vmem:[%s1869_s3] ss:$0 sm:$0xff]  ;;  %s753_s13 = smov [#allocation22] }
 0x1fc   : >> { %851 = vst [vmem:[%s829_s1] sm:$0x3] %v849_v8  ;;  %v612_v15 = vld [vmem:[%s1872_s17] sm:$0x3]  ;;  %s320_s1 = smov (%p393_p1), [#allocation21] }
 0x1fd   : >> { %864 = vst [vmem:[%s1864_s2] sm:$0x3] %v861_v7  ;;  %v615_v17 = vld [vmem:[%s611_s18] sm:$0x3]  ;;  %v616_v18 = vmul.f32 %v612_v15, %v605_v56  ;;  %v619_v19 = vmul.f32 %v612_v15, %v607_v57 }
 0x1fe   : >> { %1642 = vst [vmem:[%s1864_s2 + $0x1] sm:$0x1] %v865_v11  ;;  %v626_v20 = vmul.f32 %v615_v17, %v605_v56  ;;  %v623_v21 = vmul.f32 %v615_v17, %v607_v57  ;;  %s337_s2 = smov (%p393_p1), [#allocation22] }
 0x1ff   : >> { %875 = vst [vmem:[%s1869_s3] sm:$0x3] %v873_v12  ;;  %v618_v22 = vsub.f32 %v616_v18, %v617_v10  ;;  %v621_v25 = vadd.f32 %v620_v16, %v619_v19  ;;  %s354_s3 = smov (%p393_p1), [#allocation23] }
 0x200   : >> { %v627_v23 = vadd.f32 %v626_v20, %v625_v13  ;;  %v624_v24 = vsub.f32 %v622_v14, %v623_v21 }
 0x201   : >> { %628 = vst [vmem:[%s1872_s17] sm:$0x3] %v618_v22 }
 0x202   : >> { %631 = vst [vmem:[%s611_s18] sm:$0x3] %v627_v23 }
 0x203   : >> { %630 = vst [vmem:[%s1860_s16] sm:$0x3] %v624_v24  ;;  %s876_s16 = sadd.s32 (%p393_p1), 1, %s1707_s26  }
 0x204   : >> { %629 = vst [vmem:[%s1862_s0] sm:$0x3] %v621_v25  ;;  %s301_s0 = smov (%p393_p1), [#allocation20]  ;;  %p389_p2 = scmp.ge.s32.totalorder (%p393_p1), %s876_s16, 15 }
 0x205   : > { %s2012_s26 = smov (%p393_p1), %s876_s16 }
 0x208   : >> { %v641_v28 = vld [vmem:[%s632_s21] sm:$0x3] }
 0x209   : >> { %v682_v29 = vld [vmem:[%s673_s22] sm:$0x3]  ;;  %v645_v30 = vsel %vm644_vm12, %v640_v26, %v641_v28 }
 0x20a   : >> { %v686_v31 = vsel %vm685_vm13, %v681_v27, %v682_v29  ;;  %v667_v32 = vld [vmem:[%s660_s23] sm:$0x3]  ;;  %646 = vst [vmem:[%s632_s21] sm:$0x3] %v645_v30 }
 0x20b   : >> { %687 = vst [vmem:[%s673_s22] sm:$0x3] %v686_v31  ;;  %v671_v33 = vsel %vm670_vm14, 0.0, %v667_v32  ;;  %v654_v34 = vld [vmem:[%s647_s24] sm:$0x3] }
 0x20c   : >> { %672 = vst [vmem:[%s660_s23] sm:$0x3] %v671_v33  ;;  %v658_v35 = vsel %vm657_vm15, 0.0, %v654_v34 }
 0x20d   : >> { %659 = vst [vmem:[%s647_s24] sm:$0x3] %v658_v35 }
 0x211   : >> { %v694_v36 = vld [vmem:[%s1909_s25] sm:$0x3] }
 0x212   : >> { %v722_v37 = vld [vmem:[%s1911_s28] sm:$0x3]  ;;  %695 = vrot.lane.b32.xlu1 %v694_v36, %s1714_s30 }
 0x213   : >> { %723 = vrot.lane.b32.xlu0 %v722_v37, %s1714_s30  ;;  %v726_v38 = vld [vmem:[%s1913_s29] sm:$0x3] }
 0x214   : >> { %727 = vrot.lane.b32.xlu2 %v726_v38, %s1714_s30  ;;  %v690_v39 = vld [vmem:[%s689_s10] sm:$0x3] }
 0x215   : >> { %v711_v40 = vld [vmem:[%s689_s10] sm:$0x3] }
 0x216   : >> { %v743_v41 = vld [vmem:[%s1911_s28] sm:$0x3] }
 0x217   : >> { %v693_v44 = vld [vmem:[%s1909_s25] sm:$0x3] }
 0x218   : >> { %v725_v55 = vld [vmem:[%s1913_s29] sm:$0x3] }
 0x21a   : >> { %691 = vrot.lane.b32.xlu1 %v690_v39, %s1714_s30 }
 0x21c   : >> { %712 = vrot.lane.b32.xlu2 %v711_v40, %s1715_s11 }
 0x222   : >> { %744 = vrot.lane.b32.xlu1 %v743_v41, %s1715_s11 }
 0x26e   : >> { %v728_v42 = vpop.permute.xlu2 %727 }
 0x26f   : >> { %v732_v51 = vsel %vm699_vm1, %v726_v38, %v728_v42 }
 0x276   : >> { %v713_v43 = vpop.permute.xlu2 %712 }
 0x277   : >> { %v717_v45 = vsel %vm703_vm0, %v693_v44, %v713_v43 }
 0x278   : >> { %719 = vst [vmem:[%s689_s10] sm:$0x3] %v717_v45 }
 0x27f   : >> { %v778_v46 = vld [vmem:[%s1923_s12] ss:$0 sm:$0xff]  ;;  %v1633_v48 = vld [vmem:[%s1923_s12 + $0x1] ss:$0 sm:$0xff] }
 0x280   : >> { %v1632_v47 = vld [vmem:[%s1923_s12 - $0x1] sm:$0x2] }
 0x281   : >> { %v785_v49 = vsel %vm760_vm10, %v778_v46, %v1632_v47 }
 0x282   : >> { %788 = vst [vmem:[%s1923_s12] sm:$0x3] %v785_v49 }
 0x284   : >> { %v696_v50 = vpop.permute.xlu1 %695 }
 0x285   : >> { %v724_v52 = vpop.permute.xlu0 %723  ;;  %v700_v56 = vsel %vm699_vm1, %v694_v36, %v696_v50 }
 0x286   : >> { %v736_v53 = vsel %vm703_vm0, %v724_v52, %v732_v51 }
 0x287   : >> { %v742_v54 = vsel %vm1415_vm2, %v736_v53, 0.0 }
 0x288   : >> { %750 = vst [vmem:[%s1913_s29] sm:$0x3] %v742_v54 }
 0x28c   : >> { %v692_v57 = vpop.permute.xlu1 %691 }
 0x28d   : >> { %v704_v58 = vsel %vm703_vm0, %v692_v57, %v700_v56 }
 0x28e   : >> { %v710_v59 = vsel %vm1415_vm2, %v704_v58, 0.0 }
 0x28f   : >> { %718 = vst [vmem:[%s1909_s25] sm:$0x3] %v710_v59  ;;  %v1631_v61 = vld [vmem:[%s753_s13 + $0x1] sm:$0x1]  ;;  %v765_v4 = vld [vmem:[%s753_s13] ss:$0 sm:$0xff] }
 0x294   : >> { %v745_v60 = vpop.permute.xlu1 %744 }
 0x295   : >> { %v749_v62 = vsel %vm703_vm0, %v725_v55, %v745_v60 }
 0x296   : >> { %v754_v63 = vld [vmem:[%s752_s14] ss:$0 sm:$0xff]  ;;  %v1629_v1 = vld [vmem:[%s752_s14 + $0x1] ss:$0 sm:$0xff]  ;;  %751 = vst [vmem:[%s1911_s28] sm:$0x3] %v749_v62 }
 0x297   : >> { %v1628_v0 = vld [vmem:[%s752_s14 - $0x1] sm:$0x2]  ;;  %v773_v3 = vsel %vm772_vm11, %v1629_v1, %v1631_v61 }
 0x298   : >> { %v761_v2 = vsel %vm760_vm10, %v754_v63, %v1628_v0  ;;  %775 = vst [vmem:[%s753_s13] sm:$0x3] %v773_v3 }
 0x299   : >> { %764 = vst [vmem:[%s752_s14] sm:$0x3] %v761_v2 }
 0x29a   : >> { %1630 = vst [vmem:[%s752_s14 + $0x1] sm:$0x1] %v765_v4 }
 0x29d   : >> { %v789_v7 = vld [vmem:[%s777_s15] ss:$0 sm:$0xff]  ;;  %v1635_v8 = vld [vmem:[%s777_s15 + $0x1] sm:$0x1] }
 0x29e   : >> { %1634 = vst [vmem:[%s1923_s12 + $0x1] sm:$0x1] %v789_v7  ;;  %v797_v9 = vsel %vm772_vm11, %v1633_v48, %v1635_v8  ;;  %395 = sbr.rel (!%p393_p1) target bundleno = 233 (0xe9), region = 435 }
 0x29f   : >> { %799 = vst [vmem:[%s777_s15] sm:$0x3] %v797_v9  ;;  %v343_v14 = vld [vmem:[%s337_s2] sm:$0x3] (%p393_p1) }
 0x2a0   : > { %v344_v18 = vsel (%p393_p1), %vm1415_vm2, %v343_v14, 0.0 }
 0x2a1   : > { %v307_v10 = vld [vmem:[%s301_s0] sm:$0x3] (%p393_p1)  ;;  %v345_v20 = vmul.f32 (%p393_p1), %v344_v18, %v344_v18 }
 0x2a2   : > { %v308_v12 = vsel (%p393_p1), %vm1415_vm2, %v307_v10, 0.0 }
 0x2a3   : > { %v309_v16 = vmul.f32 %v308_v12, %v308_v12 }
 0x2a5   : > { %v326_v11 = vld [vmem:[%s320_s1] sm:$0x3]  ;;  %v313_v23 = vsel %vm312_vm3, 0.0, %v309_v16 }
 0x2a6   : > { %v327_v13 = vsel %vm1415_vm2, %v326_v11, 0.0  ;;  %v360_v15 = vld [vmem:[%s354_s3] sm:$0x3] }
 0x2a7   : > { %v328_v17 = vmul.f32 %v327_v13, %v327_v13  ;;  %v361_v19 = vsel %vm1415_vm2, %v360_v15, 0.0 }
 0x2a8   : > { %v362_v22 = vmul.f32 %v361_v19, %v361_v19 }
 0x2a9   : > { %v330_v21 = vadd.f32 %v328_v17, %v309_v16  ;;  %v329_v25 = vadd.f32 %v328_v17, %v313_v23 }
 0x2aa   : > { %v366_v28 = vsel %vm365_vm4, 0.0, %v362_v22 }
 0x2ab   : > { %v347_v24 = vadd.f32 %v345_v20, %v330_v21  ;;  %v346_v27 = vadd.f32 %v345_v20, %v329_v25 }
 0x2ad   : > { %v368_v26 = vadd.f32 %v362_v22, %v347_v24  ;;  %v367_v29 = vadd.f32 %v366_v28, %v346_v27 }
 0x2af   : > { %369 = vadd.xlane.f32.xlu0 %v368_v26 }
 0x2b7   : > { %377 = vadd.xlane.f32.xlu0 %v367_v29 }
 0x322   : > { %v370_v30 = vpop.xlane.xlu0 %369 }
 0x323   : > { %v371_v31 = vrot.slane %v370_v30, 4 }
 0x325   : > { %v372_v32 = vadd.f32 %v371_v31, %v370_v30 }
 0x327   : > { %v373_v33 = vrot.slane %v372_v32, 2 }
 0x329   : > { %v374_v37 = vadd.f32 %v373_v33, %v372_v32 }
 0x32a   : > { %v378_v34 = vpop.xlane.xlu0 %377 }
 0x32b   : > { %v379_v35 = vrot.slane %v378_v34, 4  ;;  %v375_v40 = vrot.slane %v374_v37, 1 }
 0x32d   : > { %v380_v36 = vadd.f32 %v379_v35, %v378_v34  ;;  %v376_v43 = vadd.f32 %v375_v40, %v374_v37 }
 0x32f   : > { %v381_v38 = vrot.slane %v380_v36, 2 }
 0x331   : > { %v382_v39 = vadd.f32 %v381_v38, %v380_v36 }
 0x333   : > { %v383_v41 = vrot.slane %v382_v39, 1 }
 0x335   : > { %v384_v42 = vadd.f32 %v383_v41, %v382_v39 }
 0x337   : > { %1666 = vpush %v384_v42 }
 0x338   : > { %1668 = vpush %v376_v43 }
 0x368   : > { %s1667_s27 = spop %1666 }
 0x369   : > { %s1669_s17 = spop %1668 }
 0x36a   : > { %s387_s18 = smul.f32 1e-10, %s1669_s17 }
 0x36c   : > { %p388_p3 = scmp.le.f32.partialorder %s1667_s27, %s387_s18 }
 0x36e   : > { %p390_p4 = por %p389_p2, %p388_p3 }
 0x370   :  { %878 = sbr.rel (!%p390_p4) target bundleno = 232 (0xe8), region = 446 }
 0x375 PF:  { %s879_s19 = smov [#allocation20]  ;;  %v883_v5 = vmov %v1778_v5  ;;  %v886_v6 = vmov %v1780_v6  ;;  %v933_v44 = vld [vmem:[#allocation12] sm:$0x3]  ;;  %v939_v45 = vld [vmem:[#allocation14] sm:$0x3]  ;;  %s899_s20 = smov [#allocation23] }
 0x376   :  { %v903_v5 = vmov %v1778_v5  ;;  %v906_v6 = vmov %v1780_v6  ;;  %v887_v46 = vld [vmem:[%s879_s19] sm:$0x3]  ;;  %vm890_vm5 = vcmp.eq.s32.totalorder %v886_v6, %v883_v5  ;;  %936 = vst [vmem:[#allocation13] sm:$0x3] %v933_v44  ;;  %v945_v51 = vld [vmem:[#allocation16] sm:$0x3] }
 0x377   :  { %vm910_vm6 = vcmp.eq.s32.totalorder %v906_v6, %v903_v5  ;;  %v891_v47 = vsel %vm890_vm5, %v887_v46, 0.0  ;;  %v907_v48 = vld [vmem:[%s899_s20] sm:$0x3]  ;;  %942 = vst [vmem:[#allocation15] sm:$0x3] %v939_v45  ;;  %s880_s24 = smov [#allocation8] }
 0x378   :  { %v892_v49 = vrot.slane %v891_v47, 4  ;;  %v911_v50 = vsel %vm910_vm6, %v907_v48, 0.0  ;;  %v951_v52 = vld [vmem:[#allocation18] sm:$0x3]  ;;  %948 = vst [vmem:[#allocation17] sm:$0x3] %v945_v51 }
 0x379   :  { %v912_v53 = vrot.slane %v911_v50, 4  ;;  %954 = vst [vmem:[#allocation19] sm:$0x3] %v951_v52  ;;  %s900_s29 = smov [#allocation10] }
 0x37a   :  { %v893_v54 = vadd.f32 %v892_v49, %v891_v47 }
 0x37b   :  { %v913_v55 = vadd.f32 %v912_v53, %v911_v50 }
 0x37c   :  { %v894_v56 = vrot.slane %v893_v54, 2 }
 0x37d   :  { %v914_v57 = vrot.slane %v913_v55, 2  ;;  %v1125_v58 = vld [vmem:[#allocation13] sm:$0x3] }
 0x37e   :  { %v895_v59 = vadd.f32 %v894_v56, %v893_v54  ;;  %1126 = vst [vmem:[%s2008_s6] sm:$0x3] %v1125_v58  ;;  %v1181_v5 = vld [vmem:[#allocation15] sm:$0x3] }
 0x37f   :  { %v915_v6 = vadd.f32 %v914_v57, %v913_v55  ;;  %1182 = vst [vmem:[%s2009_s7] sm:$0x3] %v1181_v5  ;;  %v1237_v61 = vld [vmem:[#allocation17] sm:$0x3] }
 0x380   :  { %v896_v60 = vrot.slane %v895_v59, 1  ;;  %1238 = vst [vmem:[%s2010_s8] sm:$0x3] %v1237_v61  ;;  %v1293_v63 = vld [vmem:[#allocation19] sm:$0x3] }
 0x381   :  { %v916_v62 = vrot.slane %v915_v6, 1  ;;  %1294 = vst [vmem:[%s2011_s9] sm:$0x3] %v1293_v63 }
 0x382   :  { %v897_v0 = vadd.f32 %v896_v60, %v895_v59 }
 0x383   :  { %v917_v1 = vadd.f32 %v916_v62, %v915_v6 }
 0x384   :  { %898 = vst [vmem:[%s880_s24] sm:$0x1] %v897_v0 }
 0x385   :  { %918 = vst [vmem:[%s900_s29] sm:$0x1] %v917_v1 }
 0x38b   :  { %v921_v2 = vld [vmem:[#allocation8] sm:$0x1] }
 0x38c   :  { %924 = vst [vmem:[#allocation9] sm:$0x1] %v921_v2  ;;  %v927_v3 = vld [vmem:[#allocation10] sm:$0x1] }
 0x38d   :  { %930 = vst [vmem:[#allocation11] sm:$0x1] %v927_v3 }
 0x393   :  { %v1011_v4 = vld [vmem:[#allocation9] sm:$0x1] }
 0x394   :  { %1012 = vst [vmem:[%s2006_s4] sm:$0x1] %v1011_v4  ;;  %v1069_v7 = vld [vmem:[#allocation11] sm:$0x1] }
 0x395   :  { %1070 = vst [vmem:[%s2007_s5] sm:$0x1] %v1069_v7 }

// kernel: custom-call.16
= control target key start
LH: loop header
LB: loop body
LE: loop exit
PB: predicated region body
PF: predicated region fallthrough
CT: control target
= control target key end

     0   :  { %v410_v1 = vmov 0.0   ;;  %s430_s11 = smov 0   ;;  %s515_s0 = inlined_call_operand.vmem [shape: f32[3,3], index: 0, kind: input, shape index: {}]   ;;  %s516_s1 = inlined_call_operand.vmem [shape: f32[3,3], index: 1, kind: output, shape index: {0}]   ;;  %s517_s2 = inlined_call_operand.vmem [shape: f32[3], index: 2, kind: output, shape index: {1}]  }
   0x1   :  { %v20_v0 = vld [vmem:[%s515_s0] sm:$0xf]  ;;  %43 = vst [vmem:[#allocation4] sm:$0x1] %v410_v1 }
   0x2   :  { %21 = vst [vmem:[#allocation1] sm:$0xf] %v20_v0 }
   0x9   :  { %v39_v2 = vld [vmem:[#allocation1] sm:$0xf] }
   0xa   :  { %40 = vst [vmem:[#allocation0] sm:$0xf] %v39_v2 }
  0x11   :  { %v41_v3 = vld [vmem:[#allocation0] sm:$0xff] }
  0x12   :  { %42 = vst [vmem:[#allocation2] sm:$0xff] %v41_v3 }
  0x13 LB: > { %v51_v4 = vlaneseq  ;;  %v439_v6 = vstv %s408_s11  ;;  %s83_s0 = scalar_lea.vmem [#allocation2], %s408_s11  ;;  %s176_s12 = smov [#allocation2]  ;;  %s408_s11 = sphi %s430_s11, %s49_s11  }
  0x14   : > { %s211_s13 = scalar_lea.vmem [#allocation6], %s408_s11  ;;  %s227_s14 = smov [#allocation2] }
  0x15   : > { %v436_v5 = vshrl.u32 %v51_v4, 7  ;;  %s228_s15 = smov [#allocation6] }
  0x17   : > { %vm55_vm0 = vcmp.gt.s32.totalorder %v436_v5, %v439_v6  ;;  %vm56_vm1 = vcmp.lt.s32.totalorder %v436_v5, 3  ;;  %v179_v5 = vmov %v436_v5 }
  0x18   : > { %vm57_vm2 = vmand %vm55_vm0, %vm56_vm1  ;;  %vm183_vm13 = vcmp.gt.s32.totalorder %v179_v5, %v439_v6  ;;  %vm184_vm14 = vcmp.lt.s32.totalorder %v179_v5, 3  ;;  %v231_v5 = vmov %v436_v5 }
  0x19   : > { %v50_v7 = vld [vmem:[#allocation2] sm:$0xff]  ;;  %v449_v20 = vld [vmem:[%s83_s0] ss:$0 sm:$0xff] }
  0x1a   : > { %v58_v8 = vsel %vm57_vm2, %v50_v7, 0.0  ;;  %v85_v23 = vand.u32 2147483647, %v449_v20  ;;  %vm154_vm12 = vcmp.lt.f32.partialorder %v449_v20, 0.0 }
  0x1b   : > { %v59_v9 = vmul.f32 %v58_v8, %v58_v8 }
  0x1c   : > { %v86_v27 = vmax.f32 %v85_v23, 0.0 }
  0x1d   : > { %v60_v10 = vrot.slane %v59_v9, 4 }
  0x1f   : > { %v61_v11 = vadd.f32 %v60_v10, %v59_v9 }
  0x21   : > { %v62_v12 = vrot.slane %v61_v11, 2 }
  0x23   : > { %v63_v13 = vadd.f32 %v62_v12, %v61_v11 }
  0x25   : > { %v64_v14 = vrot.slane %v63_v13, 1 }
  0x27   : > { %v444_v15 = vadd.f32 %v64_v14, %v63_v13 }
  0x29   : > { %392 = vrsqrt.f32 %v444_v15  ;;  %vm73_vm3 = vcmp.eq.f32.partialorder %v444_v15, inf  ;;  %v76_v24 = vand.u32 2147483648, %v444_v15  ;;  %vm75_vm4 = vcmp.eq.f32.partialorder %v444_v15, 0.0 }
  0x2f   : > { %v393_v16 = vpop.eup %392 }
  0x30   : > { %v67_v17 = vmul.f32 %v393_v16, %v444_v15 }
  0x32   : > { %v68_v18 = vmul.f32 %v393_v16, %v67_v17 }
  0x34   : > { %v69_v19 = vmul.f32 0.5, %v68_v18  ;;  %v180_v18 = vld [vmem:[%s176_s12] sm:$0xff] }
  0x36   : > { %v70_v21 = vsub.f32 1.5, %v69_v19 }
  0x38   : > { %v71_v22 = vmul.f32 %v393_v16, %v70_v21 }
  0x3a   : > { %v72_v25 = vmul.f32 %v71_v22, %v444_v15  ;;  %v205_v22 = vand.u32 127, %v51_v4 }
  0x3c   : > { %v74_v26 = vsel %vm73_vm3, %v444_v15, %v72_v25 }
  0x3d   : > { %v77_v28 = vsel %vm75_vm4, %v76_v24, %v74_v26 }
  0x3e   : > { %v87_v29 = vand.u32 2147483647, %v77_v28 }
  0x40   : > { %v88_v30 = vmax.f32 %v86_v27, %v87_v29 }
  0x42   : > { %394 = vrcp.f32 %v88_v30  ;;  %v100_v33 = vand.u32 2147483648, %v88_v30  ;;  %vm94_vm5 = vweird.f32 %v88_v30  ;;  %v98_v35 = vand.u32 2147483647, %v88_v30 }
  0x43   : > { %vm139_vm11 = vcmp.eq.f32.partialorder %v88_v30, 0.0 }
  0x44   : > { %v101_v37 = vor.u32 1.1754944e-38, %v100_v33  ;;  %vm99_vm8 = vcmp.eq.f32.partialorder %v98_v35, 8.507059e+37 }
  0x48   : > { %v395_v31 = vpop.eup %394 }
  0x49   : > { %v90_v32 = vmul.f32 %v395_v31, %v88_v30  ;;  %vm95_vm6 = vweird.f32 %v395_v31 }
  0x4a   : > { %vm96_vm7 = vmor %vm94_vm5, %vm95_vm6 }
  0x4b   : > { %v91_v34 = vsub.f32 1.0, %v90_v32  ;;  %vm185_vm5 = vmand %vm183_vm13, %vm184_vm14 }
  0x4c   : > { %v186_v26 = vsel %vm185_vm5, %v180_v18, 0.0 }
  0x4d   : > { %v92_v36 = vmul.f32 %v395_v31, %v91_v34 }
  0x4f   : > { %v93_v38 = vadd.f32 %v395_v31, %v92_v36 }
  0x51   : > { %v97_v39 = vsel %vm96_vm7, %v395_v31, %v93_v38  ;;  %v224_v38 = vld [vmem:[#allocation4] ss:$0 sm:$0xff] }
  0x52   : > { %v102_v40 = vsel %vm99_vm8, %v101_v37, %v97_v39  ;;  %v411_v37 = vmov 1.0   ;;  %v234_v39 = vld [vmem:[%s227_s14] sm:$0xff]  ;;  %s244_s14 = smov %s227_s14 }
  0x53   : > { %v103_v41 = vmul.f32 %v102_v40, %v85_v23  ;;  %v119_v42 = vmul.f32 0.0, %v102_v40  ;;  %v136_v43 = vmul.f32 %v102_v40, %v87_v29  ;;  %s269_s16 = scalar_lea.vmem %s244_s14, %s408_s11  ;;  %s49_s11 = sadd.s32 1, %s408_s11  }
  0x54   : > { %p46_p0 = scmp.ge.s32.totalorder %s49_s11, 3  }
  0x55   : > { %v104_v44 = vmul.f32 %v103_v41, %v103_v41  ;;  %v120_v45 = vmul.f32 %v119_v42, %v119_v42  ;;  %v137_v46 = vmul.f32 %v136_v43, %v136_v43 }
  0x57   : > { %v121_v47 = vadd.f32 %v120_v45, %v104_v44 }
  0x59   : > { %v138_v48 = vadd.f32 %v137_v46, %v121_v47 }
  0x5b   : > { %396 = vrsqrt.f32 %v138_v48  ;;  %vm147_vm9 = vcmp.eq.f32.partialorder %v138_v48, inf  ;;  %v150_v55 = vand.u32 2147483648, %v138_v48  ;;  %vm149_vm10 = vcmp.eq.f32.partialorder %v138_v48, 0.0 }
  0x61   : > { %v397_v49 = vpop.eup %396 }
  0x62   : > { %v141_v50 = vmul.f32 %v397_v49, %v138_v48 }
  0x64   : > { %v142_v51 = vmul.f32 %v397_v49, %v141_v50 }
  0x66   : > { %v143_v52 = vmul.f32 0.5, %v142_v51 }
  0x68   : > { %v144_v53 = vsub.f32 1.5, %v143_v52  ;;  %v255_v52 = vld [vmem:[%s244_s14] sm:$0xff] }
  0x6a   : > { %v145_v54 = vmul.f32 %v397_v49, %v144_v53 }
  0x6c   : > { %v146_v56 = vmul.f32 %v145_v54, %v138_v48 }
  0x6e   : > { %v148_v57 = vsel %vm147_vm9, %v138_v48, %v146_v56  ;;  %vm481_vm9 = vcmp.eq.s32.totalorder %v205_v22, %v439_v6 }
  0x6f   : > { %v151_v58 = vsel %vm149_vm10, %v150_v55, %v148_v57  ;;  %vm236_vm10 = vcmp.lt.s32.totalorder %v231_v5, 3  ;;  %v248_v5 = vmov %v436_v5 }
  0x70   : > { %v152_v59 = vmul.f32 %v151_v58, %v88_v30 }
  0x72   : > { %v153_v60 = vsel %vm139_vm11, 0.0, %v152_v59  ;;  %vm257_vm11 = vcmp.gt.s32.totalorder %v205_v22, %v439_v6 }
  0x73   : > { %v155_v61 = vxor.u32 2147483648, %v153_v60 }
  0x75   : > { %v156_v62 = vsel %vm154_vm12, %v153_v60, %v155_v61 }
  0x76   : > { %v463_v63 = vsel %vm75_vm4, %v449_v20, %v156_v62  ;;  %398 = vrcp.f32 %v156_v62  ;;  %vm163_vm15 = vweird.f32 %v156_v62  ;;  %v167_v11 = vand.u32 2147483647, %v156_v62 }
  0x77   : > { %v175_v0 = vsub.f32 %v449_v20, %v463_v63  ;;  %v169_v12 = vand.u32 2147483648, %v156_v62  ;;  %v157_v28 = vsub.f32 %v156_v62, %v449_v20 }
  0x78   : > { %vm168_vm8 = vcmp.eq.f32.partialorder %v167_v11, 8.507059e+37 }
  0x79   : > { %400 = vrcp.f32 %v175_v0  ;;  %v198_v9 = vand.u32 2147483648, %v175_v0  ;;  %vm192_vm1 = vweird.f32 %v175_v0  ;;  %v196_v14 = vand.u32 2147483647, %v175_v0 }
  0x7a   : > { %v170_v23 = vor.u32 1.1754944e-38, %v169_v12 }
  0x7b   : > { %v199_v21 = vor.u32 1.1754944e-38, %v198_v9  ;;  %vm197_vm7 = vcmp.eq.f32.partialorder %v196_v14, 8.507059e+37 }
  0x7c   : > { %v399_v1 = vpop.eup %398 }
  0x7d   : > { %v159_v2 = vmul.f32 %v399_v1, %v156_v62  ;;  %vm164_vm0 = vweird.f32 %v399_v1 }
  0x7e   : > { %vm469_vm3 = vmor %vm163_vm15, %vm164_vm0 }
  0x7f   : > { %v401_v3 = vpop.eup %400  ;;  %v160_v7 = vsub.f32 1.0, %v159_v2 }
  0x80   : > { %v188_v8 = vmul.f32 %v401_v3, %v175_v0  ;;  %vm193_vm2 = vweird.f32 %v401_v3 }
  0x81   : > { %v161_v10 = vmul.f32 %v399_v1, %v160_v7  ;;  %vm194_vm6 = vmor %vm192_vm1, %vm193_vm2 }
  0x82   : > { %v189_v13 = vsub.f32 1.0, %v188_v8 }
  0x83   : > { %v162_v16 = vadd.f32 %v399_v1, %v161_v10 }
  0x84   : > { %v190_v19 = vmul.f32 %v401_v3, %v189_v13 }
  0x85   : > { %v166_v25 = vsel %vm469_vm3, %v399_v1, %v162_v16 }
  0x86   : > { %v191_v24 = vadd.f32 %v401_v3, %v190_v19  ;;  %v171_v30 = vsel %vm168_vm8, %v170_v23, %v166_v25 }
  0x87   : > { %v172_v33 = vmul.f32 %v171_v30, %v157_v28 }
  0x88   : > { %v195_v27 = vsel %vm194_vm6, %v401_v3, %v191_v24 }
  0x89   : > { %v200_v29 = vsel %vm197_vm7, %v199_v21, %v195_v27  ;;  %v174_v35 = vsel %vm75_vm4, 0.0, %v172_v33 }
  0x8a   : > { %v201_v31 = vmul.f32 %v200_v29, %v186_v26  ;;  %v217_v20 = vsel %vm481_vm9, %v174_v35, 0.0 }
  0x8c   : > { %v202_v4 = vsel %vm75_vm4, 0.0, %v201_v31  ;;  %vm265_vm4 = vcmp.ge.s32.totalorder %v248_v5, %v439_v6 }
  0x8d   : > { %v207_v34 = vsel %vm481_vm9, %v202_v4, 0.0  ;;  %vm266_vm12 = vmand %vm481_vm9, %vm265_vm4 }
  0x8e   : > { %208 = vadd.xlane.f32.xlu0 %v207_v34 }
  0x96   : > { %218 = vadd.xlane.f32.xlu0 %v217_v20 }
 0x101   : > { %v209_v36 = vpop.xlane.xlu0 %208 }
 0x102   : > { %210 = vst [vmem:[#allocation6] sm:$0xff] %v209_v36 }
 0x103   : > { %212 = vst [vmem:[%s211_s13] sm:$0x1] %v411_v37 }
 0x109   : > { %v219_v40 = vpop.xlane.xlu0 %218 }
 0x10a   : > { %v233_v41 = vld [vmem:[%s228_s15] sm:$0xff]  ;;  %v225_v15 = vsel %vm481_vm9, %v219_v40, %v224_v38  ;;  %s245_s15 = smov %s228_s15 }
 0x10b   : > { %v235_v42 = vmul.f32 %v234_v39, %v233_v41  ;;  %226 = vst [vmem:[#allocation4] sm:$0x1] %v225_v15  ;;  %v253_v51 = vld [vmem:[%s245_s15] sm:$0xff] }
 0x10d   : > { %v237_v43 = vsel %vm236_vm10, %v235_v42, 0.0 }
 0x10e   : > { %v238_v44 = vrot.slane %v237_v43, 4 }
 0x110   : > { %v239_v45 = vadd.f32 %v238_v44, %v237_v43 }
 0x112   : > { %v240_v46 = vrot.slane %v239_v45, 2  ;;  %v285_v6 = vld [vmem:[#allocation4] sm:$0x1] (%p46_p0) }
 0x113   :  { %288 = vst [vmem:[#allocation5] sm:$0x1] (%p46_p0), %v285_v6 }
 0x114   : > { %v241_v47 = vadd.f32 %v240_v46, %v239_v45 }
 0x116   : > { %v242_v48 = vrot.slane %v241_v47, 1 }
 0x118   : > { %v243_v49 = vadd.f32 %v242_v48, %v241_v47 }
 0x11a   : > { %v249_v50 = vmul.f32 %v243_v49, %v219_v40  ;;  %v340_v60 = vld [vmem:[#allocation5] sm:$0x1] (%p46_p0) }
 0x11b   :  { %341 = vst [vmem:[%s517_s2] sm:$0x1] (%p46_p0), %v340_v60 }
 0x11c   : > { %v254_v53 = vmul.f32 %v253_v51, %v249_v50 }
 0x11e   : > { %v258_v54 = vsub.f32 %v255_v52, %v254_v53 }
 0x120   : > { %v259_v55 = vsel %vm257_vm11, %v258_v54, %v255_v52 }
 0x121   : > { %v267_v56 = vsel %vm266_vm12, %v253_v51, %v259_v55 }
 0x122   : > { %268 = vst [vmem:[%s244_s14] sm:$0xff] %v267_v56 }
 0x127   :  { %48 = sbr.rel (!%p46_p0) target bundleno = 19 (0x13), region = 131 }
 0x129   : > { %v270_v57 = vld [vmem:[%s269_s16] ss:$0 sm:$0xff] }
 0x12a   : > { %v275_v58 = vsel %vm481_vm9, %v463_v63, %v270_v57 }
 0x12b   : > { %276 = vst [vmem:[%s269_s16] sm:$0x1] %v275_v58 }
 0x132   :  { %v279_v5 = vld [vmem:[#allocation2] sm:$0xf] }
 0x133   :  { %282 = vst [vmem:[#allocation3] sm:$0xf] %v279_v5 }
 0x13a   :  { %v305_v59 = vld [vmem:[#allocation3] sm:$0xf] }
 0x13b   :  { %306 = vst [vmem:[%s516_s1] sm:$0xf] %v305_v59 }

// kernel: _stats_and_candidates.1
= control target key start
LH: loop header
LB: loop body
LE: loop exit
PB: predicated region body
PF: predicated region fallthrough
CT: control target
= control target key end

     0   :  { %v118_v2 = vmov 0   ;;  %vm19_vm0 = vcmask 130048   ;;  %v119_v30 = vmov 0.0   ;;  %v97_v41 = vlaneseq  ;;  %s158_s0 = inlined_call_operand.vmem [shape: f32[16,128], index: 0, kind: input, shape index: {}]   ;;  %s159_s1 = inlined_call_operand.vmem [shape: f32[16,16], index: 1, kind: input, shape index: {}]   ;;  %s160_s2 = inlined_call_operand.vmem [shape: f32[8,1], index: 2, kind: input, shape index: {}]   ;;  %s161_s3 = inlined_call_operand.vmem [shape: f32[8,128], index: 3, kind: output, shape index: {}]  }
   0x1   :  { %v15_v0 = vld [vmem:[%s158_s0 + $0x8] sm:$0xff]  ;;  %v14_v1 = vld [vmem:[%s158_s0] sm:$0xff]  ;;  %115 = vset.pattern.permute.xlu0 %v118_v2 }
   0x2   :  { %40 = vmatpush.msra.mxu0 %v15_v0  ;;  %v50_v3 = vmul.f32 %v15_v0, %v15_v0  ;;  %111 = vmatpush.msra.mxu1 %v15_v0  ;;  %v49_v4 = vmul.f32 %v14_v1, %v14_v1  ;;  %v16_v5 = vld [vmem:[%s159_s1] sm:$0xff]  ;;  %v17_v6 = vld [vmem:[%s159_s1 + $0x8] sm:$0xff]  ;;  %v98_v45 = vshrl.u32 %v97_v41, 7 }
   0x3   :  { %v18_v7 = vld [vmem:[%s160_s2] sm:$0xff] }
   0x4   :  { %81 = vperm.xlu0 %115, %v18_v7   ;;  %41 = vmatpush.msra.mxu0 %v14_v1  ;;  %v51_v8 = vadd.f32 %v50_v3, %v49_v4  ;;  %vm100_vm4 = vcmp.eq.s32.totalorder %v98_v45, 1  ;;  %vm99_vm5 = vcmp.eq.s32.totalorder %v98_v45, 0 }
   0x5   :  { %112 = vmatpush.msra.mxu1 %v14_v1  ;;  %108 = vmatmul.msk.f32.vlgmr.msra.gmra.mxu0 %vm19_vm0, %v16_v5 }
   0x6   :  { %109 = vmatmul.msk.f32.vlgmr.msra.gmra.mxu1 %vm19_vm0, %v17_v6  ;;  %v52_v9 = vrot.slane %v51_v8, 4 }
   0x8   :  { %v53_v10 = vadd.f32 %v52_v9, %v51_v8 }
   0xa   :  { %v54_v11 = vrot.slane %v53_v10, 2 }
   0xc   :  { %v55_v12 = vadd.f32 %v54_v11, %v53_v10 }
   0xe   :  { %v56_v13 = vrot.slane %v55_v12, 1 }
  0x10   :  { %v57_v14 = vadd.f32 %v56_v13, %v55_v12 }
  0x12   :  { %116 = vrsqrt.f32 %v57_v14  ;;  %vm74_vm1 = vcmp.eq.f32.partialorder %v57_v14, inf  ;;  %v77_v22 = vand.u32 2147483648, %v57_v14  ;;  %vm76_vm2 = vcmp.eq.f32.partialorder %v57_v14, 0.0 }
  0x18   :  { %v117_v15 = vpop.eup %116 }
  0x19   :  { %v68_v16 = vmul.f32 %v117_v15, %v57_v14 }
  0x1b   :  { %v69_v17 = vmul.f32 %v117_v15, %v68_v16 }
  0x1d   :  { %v70_v18 = vmul.f32 0.5, %v69_v17 }
  0x1f   :  { %v71_v19 = vsub.f32 1.5, %v70_v18 }
  0x21   :  { %v72_v20 = vmul.f32 %v117_v15, %v71_v19 }
  0x23   :  { %v73_v21 = vmul.f32 %v72_v20, %v57_v14 }
  0x25   :  { %v75_v23 = vsel %vm74_vm1, %v57_v14, %v73_v21 }
  0x26   :  { %v78_v24 = vsel %vm76_vm2, %v77_v22, %v75_v23 }
  0x27   :  { %v86_v25 = vadd.f32 1e-10, %v78_v24 }
  0x29   :  { %v87_v28 = vmul.f32 1e-05, %v86_v25 }
  0x76   :  { %v82_v26 = vpop.permute.xlu0 %81 }
  0x77   :  { %v84_v27 = vsub.f32 %v82_v26, %v78_v24 }
  0x79   :  { %v85_v29 = vand.u32 2147483647, %v84_v27 }
  0x7b   :  { %vm88_vm3 = vcmp.lt.f32.partialorder %v85_v29, %v87_v28 }
  0x7c   :  { %v110_v31 = vsel %vm88_vm3, 1.0, %v119_v30 }
  0x7d   :  { %v91_v32 = vrot.slane %v110_v31, 4 }
  0x7f   :  { %v92_v33 = vmax.f32 %v110_v31, %v91_v32 }
  0x81   :  { %v93_v37 = vrot.slane %v92_v33, 2 }
  0x82   :  { %v43_v34 = vpop.f32.mrf.mxu0 }
  0x83   :  { %v46_v35 = vpop.f32.mrf.mxu1  ;;  %v94_v40 = vmax.f32 %v92_v33, %v93_v37 }
  0x84   :  { %v58_v36 = vmul.f32 %v46_v35, %v43_v34 }
  0x85   :  { %v95_v44 = vrot.slane %v94_v40, 1 }
  0x86   :  { %v59_v38 = vrot.slane %v58_v36, 4 }
  0x87   :  { %v96_v48 = vmax.f32 %v94_v40, %v95_v44 }
  0x88   :  { %v60_v39 = vadd.f32 %v59_v38, %v58_v36 }
  0x89   :  { %v101_v51 = vsel %vm100_vm4, %v96_v48, 0.0 }
  0x8a   :  { %v61_v42 = vrot.slane %v60_v39, 2 }
  0x8c   :  { %v62_v43 = vadd.f32 %v61_v42, %v60_v39 }
  0x8e   :  { %v63_v46 = vrot.slane %v62_v43, 1 }
  0x90   :  { %v64_v47 = vadd.f32 %v63_v46, %v62_v43 }
  0x92   :  { %v65_v49 = vsub.f32 %v57_v14, %v64_v47 }
  0x94   :  { %v66_v50 = vmax.f32 %v65_v49, 0.0 }
  0x96   :  { %v102_v52 = vsel %vm99_vm5, %v66_v50, %v101_v51 }
  0x97   :  { %103 = vst [vmem:[%s161_s3] sm:$0xff] %v102_v52 }

</bundles_post_ra>
